<compile_context>
chip_gen: v6e
topology: v6e:2x2x1
jax: 0.10.0
libtpu: 0.0.40
codegen_flags: <defaults>
</compile_context>

<pallas_src>
import functools

import jax
import jax.numpy as jnp
from jax.experimental import pallas as pl
from jax.experimental.pallas import tpu as pltpu


# ---------------------------------------------------------------------------
# Fused kernel: one (image, row-tile) per grid step
# ---------------------------------------------------------------------------

def _bottleneck_kernel(xm_ref, xt_ref, xb_ref, w1_ref, w2_ref, w3_ref,
                       s1_ref, b1_ref, s2_ref, b2_ref, s3_ref, b3_ref,
                       o_ref, o1p_scr):
    # xm_ref : (TH, W, Cin) bf16   main row tile (also the residual)
    # xt_ref : (W, Cin)     bf16   row above the tile (clamped at boundary)
    # xb_ref : (W, Cin)     bf16   row below the tile (clamped at boundary)
    # w1_ref : (Cin, P) bf16   w2_ref: (3,3,P,P) bf16   w3_ref: (P, Cout) bf16
    # s*/b*  : (1, C) f32      folded BatchNorm scale / bias
    # o1p_scr: (TH+2, W+2, P) f32  zero-padded conv1 output (VMEM scratch)
    f32, bf16 = jnp.float32, jnp.bfloat16
    THp2, Wp2, P = o1p_scr.shape
    TH, W = THp2 - 2, Wp2 - 2
    Cin = xm_ref.shape[-1]
    Cout = o_ref.shape[-1]

    t = pl.program_id(1)
    num_t = pl.num_programs(1)

    w1 = w1_ref[...]
    s1 = s1_ref[...]
    b1 = b1_ref[...]

    def conv1_bn_relu(x2d):                      # (M, Cin) bf16 -> (M, P) f32
        o = jnp.dot(x2d, w1, preferred_element_type=f32)
        return jnp.maximum(o * s1 + b1, 0.0)

    # ---- conv1 (1x1) + bn1 + relu on the tile and its recomputed halos ------
    o1m = conv1_bn_relu(xm_ref[...].reshape(TH * W, Cin)).reshape(TH, W, P)
    top_valid = (t > 0).astype(f32)              # top halo is zero padding at t==0
    bot_valid = (t < num_t - 1).astype(f32)      # bottom halo zero at last tile
    o1t = conv1_bn_relu(xt_ref[...]) * top_valid          # (W, P)
    o1b = conv1_bn_relu(xb_ref[...]) * bot_valid          # (W, P)

    # ---- assemble zero-padded conv2 input in VMEM ---------------------------
    # All TH+2 rows are overwritten every step, so only the 1-column left /
    # right borders need zeroing (no full memset).
    zcol = jnp.zeros((THp2, 1, P), f32)
    o1p_scr[pl.ds(0, THp2), pl.ds(0, 1), pl.ds(0, P)] = zcol
    o1p_scr[pl.ds(0, THp2), pl.ds(W + 1, 1), pl.ds(0, P)] = zcol
    o1p_scr[pl.ds(0, 1), pl.ds(1, W), pl.ds(0, P)] = o1t.reshape(1, W, P)
    o1p_scr[pl.ds(1, TH), pl.ds(1, W), pl.ds(0, P)] = o1m
    o1p_scr[pl.ds(TH + 1, 1), pl.ds(1, W), pl.ds(0, P)] = o1b.reshape(1, W, P)

    # ---- conv2 (3x3, pad=1, stride=1) + bn2 + relu ---------------------------
    # 9 statically-unrolled bf16 MXU taps, value-chained accumulation grouped
    # per dy (first tap initializes -> no zeroed accumulator, no RMW scratch).
    acc = None
    for dy in range(3):
        part = None
        for dx in range(3):
            tap = o1p_scr[pl.ds(dy, TH), pl.ds(dx, W), pl.ds(0, P)]
            tap = tap.reshape(TH * W, P).astype(bf16)
            d = jnp.dot(tap, w2_ref[dy, dx], preferred_element_type=f32)
            part = d if part is None else part + d
        acc = part if acc is None else acc + part
    o2 = jnp.maximum(acc * s2_ref[...] + b2_ref[...], 0.0).astype(bf16)  # (TH*W, P)

    # ---- conv3 (1x1) + bn3 + residual add + relu ----------------------------
    y = jnp.dot(o2, w3_ref[...], preferred_element_type=f32)             # (TH*W, Cout)
    y = y * s3_ref[...] + b3_ref[...]
    y = y + xm_ref[...].reshape(TH * W, Cin).astype(f32)                 # residual re-read
    o_ref[...] = jnp.maximum(y, 0.0).reshape(TH, W, Cout).astype(o_ref.dtype)


# ---------------------------------------------------------------------------
# JAX wrapper
# ---------------------------------------------------------------------------

def _fold_bn(gamma, beta, mean, var, eps=1e-5):
    scale = gamma / jnp.sqrt(var + eps)
    bias = beta - mean * scale
    return (scale.reshape(1, -1).astype(jnp.float32),
            bias.reshape(1, -1).astype(jnp.float32))


@functools.partial(jax.jit, static_argnames=("row_tile",))
def bottleneck_forward(x_nchw, params, *, row_tile=32):
    # Module boundary is NCHW (PyTorch); compute in NHWC so the channel
    # contraction maps onto the MXU lane dim.  bf16 operands for the MXU.
    x = jnp.transpose(x_nchw, (0, 2, 3, 1)).astype(jnp.bfloat16)   # (N, H, W, Cin)
    N, H, W, Cin = x.shape

    w1 = params["w1"].astype(jnp.bfloat16)         # (Cin, P)
    w2 = params["w2"].astype(jnp.bfloat16)         # (3, 3, P, P)
    w3 = params["w3"].astype(jnp.bfloat16)         # (P, 4P)
    s1, b1 = _fold_bn(*params["bn1"])
    s2, b2 = _fold_bn(*params["bn2"])
    s3, b3 = _fold_bn(*params["bn3"])

    P = w1.shape[1]
    Cout = w3.shape[1]
    assert Cout == Cin, "identity residual requires inplanes == 4*planes"

    # Row-tile height: largest divisor of H that is <= row_tile.
    # TODO(synk): handle H not divisible by the desired tile via a masked tail.
    TH = min(row_tile, H)
    while H % TH:
        TH -= 1
    n_th = H // TH

    def xmain_map(n, t):
        return (n, t, 0, 0)

    def xtop_map(n, t):                       # row above the tile, clamped
        return (n, jnp.maximum(t * TH - 1, 0), 0, 0)

    def xbot_map(n, t):                       # row below the tile, clamped
        return (n, jnp.minimum(t * TH + TH, H - 1), 0, 0)

    const2 = lambda n, t: (0, 0)
    const4 = lambda n, t: (0, 0, 0, 0)

    out = pl.pallas_call(
        _bottleneck_kernel,
        out_shape=jax.ShapeDtypeStruct((N, H, W, Cout), jnp.float32),
        grid_spec=pltpu.PrefetchScalarGridSpec(
            num_scalar_prefetch=0,
            grid=(N, n_th),
            in_specs=[
                pl.BlockSpec((None, TH, W, Cin), xmain_map),     # x main tile
                pl.BlockSpec((None, None, W, Cin), xtop_map),    # x top halo row
                pl.BlockSpec((None, None, W, Cin), xbot_map),    # x bottom halo row
                pl.BlockSpec((Cin, P), const2),                  # w1
                pl.BlockSpec((3, 3, P, P), const4),              # w2
                pl.BlockSpec((P, Cout), const2),                 # w3
                pl.BlockSpec((1, P), const2),                    # s1
                pl.BlockSpec((1, P), const2),                    # b1
                pl.BlockSpec((1, P), const2),                    # s2
                pl.BlockSpec((1, P), const2),                    # b2
                pl.BlockSpec((1, Cout), const2),                 # s3
                pl.BlockSpec((1, Cout), const2),                 # b3
            ],
            out_specs=pl.BlockSpec((None, TH, W, Cout), xmain_map),
            scratch_shapes=[
                pltpu.VMEM((TH + 2, W + 2, P), jnp.float32),     # padded conv1 out
            ],
        ),
        compiler_params=pltpu.CompilerParams(
            # batch AND row-tile axes are independent -> shard both over TCs
            dimension_semantics=("parallel", "parallel"),
            # one config safe on v5e/v6e (128 MiB) and v7x (64 MiB physical)
            vmem_limit_bytes=56 * 1024 * 1024,
        ),
    )(x, x, x, w1, w2, w3, s1, b1, s2, b2, s3, b3)

    return jnp.transpose(out, (0, 3, 1, 2))                      # back to NCHW, f32


# ---------------------------------------------------------------------------
# Pure-JAX reference (correctness check, full f32)
# ---------------------------------------------------------------------------

def bottleneck_reference(x_nchw, params):
    x = jnp.transpose(x_nchw, (0, 2, 3, 1)).astype(jnp.float32)

    def conv(a, w, window):  # w: (kh, kw, Cin, Cout)
        return jax.lax.conv_general_dilated(
            a, w, window_strides=(1, 1),
            padding=[(window // 2, window // 2)] * 2,
            dimension_numbers=("NHWC", "HWIO", "NHWC"))

    def bn(a, p):
        g, b, m, v = p
        return (a - m) / jnp.sqrt(v + 1e-5) * g + b

    w1 = params["w1"][None, None]
    w2 = params["w2"]
    w3 = params["w3"][None, None]

    o = jax.nn.relu(bn(conv(x, w1, 1), params["bn1"]))
    o = jax.nn.relu(bn(conv(o, w2, 3), params["bn2"]))
    o = bn(conv(o, w3, 1), params["bn3"])
    o = jax.nn.relu(o + x)
    return jnp.transpose(o, (0, 3, 1, 2))


# ---------------------------------------------------------------------------
# Main
# ---------------------------------------------------------------------------

if __name__ == "__main__":
    key = jax.random.PRNGKey(0)
    N, H, W = 2, 16, 16
    planes = 4
    inplanes = planes * 4   # identity residual requires inplanes == 4*planes

    ks = jax.random.split(key, 10)
    params = {
        # conv weights stored channels-last-contraction:
        #   (Cin, Cout) for 1x1, (kh, kw, Cin, Cout) for 3x3
        # (PyTorch (Cout, Cin, kh, kw) converts via transpose(2, 3, 1, 0)).
        "w1": 0.1 * jax.random.normal(ks[0], (inplanes, planes), jnp.float32),
        "w2": 0.1 * jax.random.normal(ks[1], (3, 3, planes, planes), jnp.float32),
        "w3": 0.1 * jax.random.normal(ks[2], (planes, planes * 4), jnp.float32),
        # BatchNorm (inference): gamma, beta, running_mean, running_var
        "bn1": (1.0 + 0.1 * jax.random.normal(ks[3], (planes,), jnp.float32),
                0.1 * jax.random.normal(ks[4], (planes,), jnp.float32),
                jnp.zeros((planes,), jnp.float32),
                jnp.ones((planes,), jnp.float32)),
        "bn2": (1.0 + 0.1 * jax.random.normal(ks[5], (planes,), jnp.float32),
                0.1 * jax.random.normal(ks[6], (planes,), jnp.float32),
                jnp.zeros((planes,), jnp.float32),
                jnp.ones((planes,), jnp.float32)),
        "bn3": (1.0 + 0.1 * jax.random.normal(ks[7], (planes * 4,), jnp.float32),
                0.1 * jax.random.normal(ks[8], (planes * 4,), jnp.float32),
                jnp.zeros((planes * 4,), jnp.float32),
                jnp.ones((planes * 4,), jnp.float32)),
    }

    x = jax.random.normal(ks[9], (N, inplanes, H, W), jnp.float32)  # NCHW

    # row_tile=8 -> 2 row tiles per image: exercises both the image-boundary
    # (zero) halo path and the recomputed-neighbor halo path.
    out = jax.block_until_ready(bottleneck_forward(x, params, row_tile=8))
    ref = jax.block_until_ready(bottleneck_reference(x, params))

    assert out.shape == (N, inplanes, H, W)
    err = float(jnp.max(jnp.abs(out - ref)))
    ref_scale = float(jnp.max(jnp.abs(ref)))
    # bf16 MXU operands -> relative tolerance instead of tight absolute.
    assert err <= 2e-2 * ref_scale + 2e-2, (
        f"mismatch vs reference: max_err={err}, ref_scale={ref_scale}")

    print("KERNEL_OK")
</pallas_src>

<mosaic_0001>
module attributes {stable_mosaic.version = 11 : i64} {
  func.func @_bottleneck_kernel(%arg0: i32, %arg1: i32, %arg2: memref<1x8x16x16xbf16, #tpu.memory_space<vmem>>, %arg3: memref<1x1x16x16xbf16, #tpu.memory_space<vmem>>, %arg4: memref<1x1x16x16xbf16, #tpu.memory_space<vmem>>, %arg5: memref<16x4xbf16, #tpu.memory_space<vmem>>, %arg6: memref<3x3x4x4xbf16, #tpu.memory_space<vmem>>, %arg7: memref<4x16xbf16, #tpu.memory_space<vmem>>, %arg8: memref<1x4xf32, #tpu.memory_space<vmem>>, %arg9: memref<1x4xf32, #tpu.memory_space<vmem>>, %arg10: memref<1x4xf32, #tpu.memory_space<vmem>>, %arg11: memref<1x4xf32, #tpu.memory_space<vmem>>, %arg12: memref<1x16xf32, #tpu.memory_space<vmem>>, %arg13: memref<1x16xf32, #tpu.memory_space<vmem>>, %arg14: memref<1x8x16x16xf32, #tpu.memory_space<vmem>>, %arg15: memref<10x18x4xf32, #tpu.memory_space<vmem>>) attributes {dimension_semantics = [#tpu.dimension_semantics<parallel>, #tpu.dimension_semantics<parallel>], iteration_bounds = array<i64: 2, 2>, scalar_prefetch = 0 : i64, scratch_operands = 1 : i64, tpu.core_type = #tpu.core_type<tc>, window_params = [{transform_indices = @transform_0, window_bounds = array<i64: 1, 8, 16, 16>}, {transform_indices = @transform_1, window_bounds = array<i64: 1, 1, 16, 16>}, {transform_indices = @transform_2, window_bounds = array<i64: 1, 1, 16, 16>}, {pipeline_mode = #tpu.pipeline_mode<synchronous>, transform_indices = @transform_3, window_bounds = array<i64: 16, 4>}, {pipeline_mode = #tpu.pipeline_mode<synchronous>, transform_indices = @transform_4, window_bounds = array<i64: 3, 3, 4, 4>}, {pipeline_mode = #tpu.pipeline_mode<synchronous>, transform_indices = @transform_5, window_bounds = array<i64: 4, 16>}, {pipeline_mode = #tpu.pipeline_mode<synchronous>, transform_indices = @transform_6, window_bounds = array<i64: 1, 4>}, {pipeline_mode = #tpu.pipeline_mode<synchronous>, transform_indices = @transform_7, window_bounds = array<i64: 1, 4>}, {pipeline_mode = #tpu.pipeline_mode<synchronous>, transform_indices = @transform_8, window_bounds = array<i64: 1, 4>}, {pipeline_mode = #tpu.pipeline_mode<synchronous>, transform_indices = @transform_9, window_bounds = array<i64: 1, 4>}, {pipeline_mode = #tpu.pipeline_mode<synchronous>, transform_indices = @transform_10, window_bounds = array<i64: 1, 16>}, {pipeline_mode = #tpu.pipeline_mode<synchronous>, transform_indices = @transform_11, window_bounds = array<i64: 1, 16>}, {transform_indices = @transform_12, window_bounds = array<i64: 1, 8, 16, 16>}]} {
    %c0 = arith.constant 0 : index
    %c0_0 = arith.constant 0 : index
    %0 = vector.load %arg5[%c0, %c0_0] : memref<16x4xbf16, #tpu.memory_space<vmem>>, vector<16x4xbf16>
    %c0_1 = arith.constant 0 : index
    %c0_2 = arith.constant 0 : index
    %1 = vector.load %arg8[%c0_1, %c0_2] : memref<1x4xf32, #tpu.memory_space<vmem>>, vector<1x4xf32>
    %c0_3 = arith.constant 0 : index
    %c0_4 = arith.constant 0 : index
    %2 = vector.load %arg9[%c0_3, %c0_4] : memref<1x4xf32, #tpu.memory_space<vmem>>, vector<1x4xf32>
    %c0_5 = arith.constant 0 : index
    %c0_6 = arith.constant 0 : index
    %c0_7 = arith.constant 0 : index
    %c0_8 = arith.constant 0 : index
    %3 = vector.load %arg2[%c0_5, %c0_6, %c0_7, %c0_8] : memref<1x8x16x16xbf16, #tpu.memory_space<vmem>>, vector<1x8x16x16xbf16>
    %4 = vector.shape_cast %3 : vector<1x8x16x16xbf16> to vector<8x16x16xbf16>
    %5 = vector.shape_cast %4 : vector<8x16x16xbf16> to vector<128x16xbf16>
    %cst = arith.constant dense<0.000000e+00> : vector<128x4xf32>
    %6 = tpu.matmul %5, %0, %cst {dimension_numbers = #tpu.dot_dimension_numbers<[1], [0], [0], [1], [0, 0, 1, 1], [], []>} : vector<128x16xbf16>, vector<16x4xbf16>, vector<128x4xf32> -> vector<128x4xf32>
    %7 = vector.broadcast %1 : vector<1x4xf32> to vector<128x4xf32>
    %8 = arith.mulf %6, %7 : vector<128x4xf32>
    %9 = vector.broadcast %2 : vector<1x4xf32> to vector<128x4xf32>
    %10 = arith.addf %8, %9 : vector<128x4xf32>
    %cst_9 = arith.constant 0.000000e+00 : f32
    %11 = vector.broadcast %cst_9 : f32 to vector<128x4xf32>
    %12 = arith.maximumf %10, %11 : vector<128x4xf32>
    %13 = vector.shape_cast %12 : vector<128x4xf32> to vector<8x16x4xf32>
    %c0_i32 = arith.constant 0 : i32
    %14 = arith.cmpi sgt, %arg1, %c0_i32 : i32
    %15 = arith.extui %14 : i1 to i32
    %16 = arith.sitofp %15 : i32 to f32
    %c1_i32 = arith.constant 1 : i32
    %17 = arith.cmpi slt, %arg1, %c1_i32 : i32
    %18 = arith.extui %17 : i1 to i32
    %19 = arith.sitofp %18 : i32 to f32
    %c0_10 = arith.constant 0 : index
    %c0_11 = arith.constant 0 : index
    %c0_12 = arith.constant 0 : index
    %c0_13 = arith.constant 0 : index
    %20 = vector.load %arg3[%c0_10, %c0_11, %c0_12, %c0_13] : memref<1x1x16x16xbf16, #tpu.memory_space<vmem>>, vector<1x1x16x16xbf16>
    %21 = vector.shape_cast %20 : vector<1x1x16x16xbf16> to vector<16x16xbf16>
    %cst_14 = arith.constant dense<0.000000e+00> : vector<16x4xf32>
    %22 = tpu.matmul %21, %0, %cst_14 {dimension_numbers = #tpu.dot_dimension_numbers<[1], [0], [0], [1], [0, 0, 1, 1], [], []>} : vector<16x16xbf16>, vector<16x4xbf16>, vector<16x4xf32> -> vector<16x4xf32>
    %23 = vector.broadcast %1 : vector<1x4xf32> to vector<16x4xf32>
    %24 = arith.mulf %22, %23 : vector<16x4xf32>
    %25 = vector.broadcast %2 : vector<1x4xf32> to vector<16x4xf32>
    %26 = arith.addf %24, %25 : vector<16x4xf32>
    %cst_15 = arith.constant 0.000000e+00 : f32
    %27 = vector.broadcast %cst_15 : f32 to vector<16x4xf32>
    %28 = arith.maximumf %26, %27 : vector<16x4xf32>
    %29 = vector.broadcast %16 : f32 to vector<16x4xf32>
    %30 = arith.mulf %28, %29 : vector<16x4xf32>
    %c0_16 = arith.constant 0 : index
    %c0_17 = arith.constant 0 : index
    %c0_18 = arith.constant 0 : index
    %c0_19 = arith.constant 0 : index
    %31 = vector.load %arg4[%c0_16, %c0_17, %c0_18, %c0_19] : memref<1x1x16x16xbf16, #tpu.memory_space<vmem>>, vector<1x1x16x16xbf16>
    %32 = vector.shape_cast %31 : vector<1x1x16x16xbf16> to vector<16x16xbf16>
    %cst_20 = arith.constant dense<0.000000e+00> : vector<16x4xf32>
    %33 = tpu.matmul %32, %0, %cst_20 {dimension_numbers = #tpu.dot_dimension_numbers<[1], [0], [0], [1], [0, 0, 1, 1], [], []>} : vector<16x16xbf16>, vector<16x4xbf16>, vector<16x4xf32> -> vector<16x4xf32>
    %34 = vector.broadcast %1 : vector<1x4xf32> to vector<16x4xf32>
    %35 = arith.mulf %33, %34 : vector<16x4xf32>
    %36 = vector.broadcast %2 : vector<1x4xf32> to vector<16x4xf32>
    %37 = arith.addf %35, %36 : vector<16x4xf32>
    %cst_21 = arith.constant 0.000000e+00 : f32
    %38 = vector.broadcast %cst_21 : f32 to vector<16x4xf32>
    %39 = arith.maximumf %37, %38 : vector<16x4xf32>
    %40 = vector.broadcast %19 : f32 to vector<16x4xf32>
    %41 = arith.mulf %39, %40 : vector<16x4xf32>
    %cst_22 = arith.constant 0.000000e+00 : f32
    %42 = vector.broadcast %cst_22 : f32 to vector<10x1x4xf32>
    %c0_23 = arith.constant 0 : index
    %c0_24 = arith.constant 0 : index
    %c0_25 = arith.constant 0 : index
    %43 = vector.load %arg15[%c0_23, %c0_24, %c0_25] : memref<10x18x4xf32, #tpu.memory_space<vmem>>, vector<10x1x4xf32>
    tpu.vector_store %arg15[%c0_23, %c0_24, %c0_25], %42 {strides = array<i32>} : memref<10x18x4xf32, #tpu.memory_space<vmem>>, vector<10x1x4xf32>,
    %c0_26 = arith.constant 0 : index
    %c17 = arith.constant 17 : index
    %c0_27 = arith.constant 0 : index
    %44 = vector.load %arg15[%c0_26, %c17, %c0_27] : memref<10x18x4xf32, #tpu.memory_space<vmem>>, vector<10x1x4xf32>
    tpu.vector_store %arg15[%c0_26, %c17, %c0_27], %42 {strides = array<i32>} : memref<10x18x4xf32, #tpu.memory_space<vmem>>, vector<10x1x4xf32>,
    %45 = vector.shape_cast %30 : vector<16x4xf32> to vector<1x16x4xf32>
    %c0_28 = arith.constant 0 : index
    %c1 = arith.constant 1 : index
    %c0_29 = arith.constant 0 : index
    %46 = vector.load %arg15[%c0_28, %c1, %c0_29] : memref<10x18x4xf32, #tpu.memory_space<vmem>>, vector<1x16x4xf32>
    tpu.vector_store %arg15[%c0_28, %c1, %c0_29], %45 {strides = array<i32>} : memref<10x18x4xf32, #tpu.memory_space<vmem>>, vector<1x16x4xf32>,
    %c1_30 = arith.constant 1 : index
    %c1_31 = arith.constant 1 : index
    %c0_32 = arith.constant 0 : index
    %47 = vector.load %arg15[%c1_30, %c1_31, %c0_32] : memref<10x18x4xf32, #tpu.memory_space<vmem>>, vector<8x16x4xf32>
    tpu.vector_store %arg15[%c1_30, %c1_31, %c0_32], %13 {strides = array<i32>} : memref<10x18x4xf32, #tpu.memory_space<vmem>>, vector<8x16x4xf32>,
    %48 = vector.shape_cast %41 : vector<16x4xf32> to vector<1x16x4xf32>
    %c9 = arith.constant 9 : index
    %c1_33 = arith.constant 1 : index
    %c0_34 = arith.constant 0 : index
    %49 = vector.load %arg15[%c9, %c1_33, %c0_34] : memref<10x18x4xf32, #tpu.memory_space<vmem>>, vector<1x16x4xf32>
    tpu.vector_store %arg15[%c9, %c1_33, %c0_34], %48 {strides = array<i32>} : memref<10x18x4xf32, #tpu.memory_space<vmem>>, vector<1x16x4xf32>,
    %c0_35 = arith.constant 0 : index
    %c0_36 = arith.constant 0 : index
    %c0_37 = arith.constant 0 : index
    %50 = vector.load %arg15[%c0_35, %c0_36, %c0_37] : memref<10x18x4xf32, #tpu.memory_space<vmem>>, vector<8x16x4xf32>
    %51 = vector.shape_cast %50 : vector<8x16x4xf32> to vector<128x4xf32>
    %52 = arith.truncf %51 : vector<128x4xf32> to vector<128x4xbf16>
    %c0_38 = arith.constant 0 : index
    %c0_39 = arith.constant 0 : index
    %c0_40 = arith.constant 0 : index
    %c0_41 = arith.constant 0 : index
    %53 = vector.load %arg6[%c0_38, %c0_39, %c0_40, %c0_41] : memref<3x3x4x4xbf16, #tpu.memory_space<vmem>>, vector<1x1x4x4xbf16>
    %54 = vector.shape_cast %53 : vector<1x1x4x4xbf16> to vector<4x4xbf16>
    %cst_42 = arith.constant dense<0.000000e+00> : vector<128x4xf32>
    %55 = tpu.matmul %52, %54, %cst_42 {dimension_numbers = #tpu.dot_dimension_numbers<[1], [0], [0], [1], [0, 0, 1, 1], [], []>} : vector<128x4xbf16>, vector<4x4xbf16>, vector<128x4xf32> -> vector<128x4xf32>
    %c0_43 = arith.constant 0 : index
    %c1_44 = arith.constant 1 : index
    %c0_45 = arith.constant 0 : index
    %56 = vector.load %arg15[%c0_43, %c1_44, %c0_45] : memref<10x18x4xf32, #tpu.memory_space<vmem>>, vector<8x16x4xf32>
    %57 = vector.shape_cast %56 : vector<8x16x4xf32> to vector<128x4xf32>
    %58 = arith.truncf %57 : vector<128x4xf32> to vector<128x4xbf16>
    %c0_46 = arith.constant 0 : index
    %c1_47 = arith.constant 1 : index
    %c0_48 = arith.constant 0 : index
    %c0_49 = arith.constant 0 : index
    %59 = vector.load %arg6[%c0_46, %c1_47, %c0_48, %c0_49] : memref<3x3x4x4xbf16, #tpu.memory_space<vmem>>, vector<1x1x4x4xbf16>
    %60 = vector.shape_cast %59 : vector<1x1x4x4xbf16> to vector<4x4xbf16>
    %cst_50 = arith.constant dense<0.000000e+00> : vector<128x4xf32>
    %61 = tpu.matmul %58, %60, %cst_50 {dimension_numbers = #tpu.dot_dimension_numbers<[1], [0], [0], [1], [0, 0, 1, 1], [], []>} : vector<128x4xbf16>, vector<4x4xbf16>, vector<128x4xf32> -> vector<128x4xf32>
    %62 = arith.addf %55, %61 : vector<128x4xf32>
    %c0_51 = arith.constant 0 : index
    %c2 = arith.constant 2 : index
    %c0_52 = arith.constant 0 : index
    %63 = vector.load %arg15[%c0_51, %c2, %c0_52] : memref<10x18x4xf32, #tpu.memory_space<vmem>>, vector<8x16x4xf32>
    %64 = vector.shape_cast %63 : vector<8x16x4xf32> to vector<128x4xf32>
    %65 = arith.truncf %64 : vector<128x4xf32> to vector<128x4xbf16>
    %c0_53 = arith.constant 0 : index
    %c2_54 = arith.constant 2 : index
    %c0_55 = arith.constant 0 : index
    %c0_56 = arith.constant 0 : index
    %66 = vector.load %arg6[%c0_53, %c2_54, %c0_55, %c0_56] : memref<3x3x4x4xbf16, #tpu.memory_space<vmem>>, vector<1x1x4x4xbf16>
    %67 = vector.shape_cast %66 : vector<1x1x4x4xbf16> to vector<4x4xbf16>
    %cst_57 = arith.constant dense<0.000000e+00> : vector<128x4xf32>
    %68 = tpu.matmul %65, %67, %cst_57 {dimension_numbers = #tpu.dot_dimension_numbers<[1], [0], [0], [1], [0, 0, 1, 1], [], []>} : vector<128x4xbf16>, vector<4x4xbf16>, vector<128x4xf32> -> vector<128x4xf32>
    %69 = arith.addf %62, %68 : vector<128x4xf32>
    %c1_58 = arith.constant 1 : index
    %c0_59 = arith.constant 0 : index
    %c0_60 = arith.constant 0 : index
    %70 = vector.load %arg15[%c1_58, %c0_59, %c0_60] : memref<10x18x4xf32, #tpu.memory_space<vmem>>, vector<8x16x4xf32>
    %71 = vector.shape_cast %70 : vector<8x16x4xf32> to vector<128x4xf32>
    %72 = arith.truncf %71 : vector<128x4xf32> to vector<128x4xbf16>
    %c1_61 = arith.constant 1 : index
    %c0_62 = arith.constant 0 : index
    %c0_63 = arith.constant 0 : index
    %c0_64 = arith.constant 0 : index
    %73 = vector.load %arg6[%c1_61, %c0_62, %c0_63, %c0_64] : memref<3x3x4x4xbf16, #tpu.memory_space<vmem>>, vector<1x1x4x4xbf16>
    %74 = vector.shape_cast %73 : vector<1x1x4x4xbf16> to vector<4x4xbf16>
    %cst_65 = arith.constant dense<0.000000e+00> : vector<128x4xf32>
    %75 = tpu.matmul %72, %74, %cst_65 {dimension_numbers = #tpu.dot_dimension_numbers<[1], [0], [0], [1], [0, 0, 1, 1], [], []>} : vector<128x4xbf16>, vector<4x4xbf16>, vector<128x4xf32> -> vector<128x4xf32>
    %c1_66 = arith.constant 1 : index
    %c1_67 = arith.constant 1 : index
    %c0_68 = arith.constant 0 : index
    %76 = vector.load %arg15[%c1_66, %c1_67, %c0_68] : memref<10x18x4xf32, #tpu.memory_space<vmem>>, vector<8x16x4xf32>
    %77 = vector.shape_cast %76 : vector<8x16x4xf32> to vector<128x4xf32>
    %78 = arith.truncf %77 : vector<128x4xf32> to vector<128x4xbf16>
    %c1_69 = arith.constant 1 : index
    %c1_70 = arith.constant 1 : index
    %c0_71 = arith.constant 0 : index
    %c0_72 = arith.constant 0 : index
    %79 = vector.load %arg6[%c1_69, %c1_70, %c0_71, %c0_72] : memref<3x3x4x4xbf16, #tpu.memory_space<vmem>>, vector<1x1x4x4xbf16>
    %80 = vector.shape_cast %79 : vector<1x1x4x4xbf16> to vector<4x4xbf16>
    %cst_73 = arith.constant dense<0.000000e+00> : vector<128x4xf32>
    %81 = tpu.matmul %78, %80, %cst_73 {dimension_numbers = #tpu.dot_dimension_numbers<[1], [0], [0], [1], [0, 0, 1, 1], [], []>} : vector<128x4xbf16>, vector<4x4xbf16>, vector<128x4xf32> -> vector<128x4xf32>
    %82 = arith.addf %75, %81 : vector<128x4xf32>
    %c1_74 = arith.constant 1 : index
    %c2_75 = arith.constant 2 : index
    %c0_76 = arith.constant 0 : index
    %83 = vector.load %arg15[%c1_74, %c2_75, %c0_76] : memref<10x18x4xf32, #tpu.memory_space<vmem>>, vector<8x16x4xf32>
    %84 = vector.shape_cast %83 : vector<8x16x4xf32> to vector<128x4xf32>
    %85 = arith.truncf %84 : vector<128x4xf32> to vector<128x4xbf16>
    %c1_77 = arith.constant 1 : index
    %c2_78 = arith.constant 2 : index
    %c0_79 = arith.constant 0 : index
    %c0_80 = arith.constant 0 : index
    %86 = vector.load %arg6[%c1_77, %c2_78, %c0_79, %c0_80] : memref<3x3x4x4xbf16, #tpu.memory_space<vmem>>, vector<1x1x4x4xbf16>
    %87 = vector.shape_cast %86 : vector<1x1x4x4xbf16> to vector<4x4xbf16>
    %cst_81 = arith.constant dense<0.000000e+00> : vector<128x4xf32>
    %88 = tpu.matmul %85, %87, %cst_81 {dimension_numbers = #tpu.dot_dimension_numbers<[1], [0], [0], [1], [0, 0, 1, 1], [], []>} : vector<128x4xbf16>, vector<4x4xbf16>, vector<128x4xf32> -> vector<128x4xf32>
    %89 = arith.addf %82, %88 : vector<128x4xf32>
    %90 = arith.addf %69, %89 : vector<128x4xf32>
    %c2_82 = arith.constant 2 : index
    %c0_83 = arith.constant 0 : index
    %c0_84 = arith.constant 0 : index
    %91 = vector.load %arg15[%c2_82, %c0_83, %c0_84] : memref<10x18x4xf32, #tpu.memory_space<vmem>>, vector<8x16x4xf32>
    %92 = vector.shape_cast %91 : vector<8x16x4xf32> to vector<128x4xf32>
    %93 = arith.truncf %92 : vector<128x4xf32> to vector<128x4xbf16>
    %c2_85 = arith.constant 2 : index
    %c0_86 = arith.constant 0 : index
    %c0_87 = arith.constant 0 : index
    %c0_88 = arith.constant 0 : index
    %94 = vector.load %arg6[%c2_85, %c0_86, %c0_87, %c0_88] : memref<3x3x4x4xbf16, #tpu.memory_space<vmem>>, vector<1x1x4x4xbf16>
    %95 = vector.shape_cast %94 : vector<1x1x4x4xbf16> to vector<4x4xbf16>
    %cst_89 = arith.constant dense<0.000000e+00> : vector<128x4xf32>
    %96 = tpu.matmul %93, %95, %cst_89 {dimension_numbers = #tpu.dot_dimension_numbers<[1], [0], [0], [1], [0, 0, 1, 1], [], []>} : vector<128x4xbf16>, vector<4x4xbf16>, vector<128x4xf32> -> vector<128x4xf32>
    %c2_90 = arith.constant 2 : index
    %c1_91 = arith.constant 1 : index
    %c0_92 = arith.constant 0 : index
    %97 = vector.load %arg15[%c2_90, %c1_91, %c0_92] : memref<10x18x4xf32, #tpu.memory_space<vmem>>, vector<8x16x4xf32>
    %98 = vector.shape_cast %97 : vector<8x16x4xf32> to vector<128x4xf32>
    %99 = arith.truncf %98 : vector<128x4xf32> to vector<128x4xbf16>
    %c2_93 = arith.constant 2 : index
    %c1_94 = arith.constant 1 : index
    %c0_95 = arith.constant 0 : index
    %c0_96 = arith.constant 0 : index
    %100 = vector.load %arg6[%c2_93, %c1_94, %c0_95, %c0_96] : memref<3x3x4x4xbf16, #tpu.memory_space<vmem>>, vector<1x1x4x4xbf16>
    %101 = vector.shape_cast %100 : vector<1x1x4x4xbf16> to vector<4x4xbf16>
    %cst_97 = arith.constant dense<0.000000e+00> : vector<128x4xf32>
    %102 = tpu.matmul %99, %101, %cst_97 {dimension_numbers = #tpu.dot_dimension_numbers<[1], [0], [0], [1], [0, 0, 1, 1], [], []>} : vector<128x4xbf16>, vector<4x4xbf16>, vector<128x4xf32> -> vector<128x4xf32>
    %103 = arith.addf %96, %102 : vector<128x4xf32>
    %c2_98 = arith.constant 2 : index
    %c2_99 = arith.constant 2 : index
    %c0_100 = arith.constant 0 : index
    %104 = vector.load %arg15[%c2_98, %c2_99, %c0_100] : memref<10x18x4xf32, #tpu.memory_space<vmem>>, vector<8x16x4xf32>
    %105 = vector.shape_cast %104 : vector<8x16x4xf32> to vector<128x4xf32>
    %106 = arith.truncf %105 : vector<128x4xf32> to vector<128x4xbf16>
    %c2_101 = arith.constant 2 : index
    %c2_102 = arith.constant 2 : index
    %c0_103 = arith.constant 0 : index
    %c0_104 = arith.constant 0 : index
    %107 = vector.load %arg6[%c2_101, %c2_102, %c0_103, %c0_104] : memref<3x3x4x4xbf16, #tpu.memory_space<vmem>>, vector<1x1x4x4xbf16>
    %108 = vector.shape_cast %107 : vector<1x1x4x4xbf16> to vector<4x4xbf16>
    %cst_105 = arith.constant dense<0.000000e+00> : vector<128x4xf32>
    %109 = tpu.matmul %106, %108, %cst_105 {dimension_numbers = #tpu.dot_dimension_numbers<[1], [0], [0], [1], [0, 0, 1, 1], [], []>} : vector<128x4xbf16>, vector<4x4xbf16>, vector<128x4xf32> -> vector<128x4xf32>
    %110 = arith.addf %103, %109 : vector<128x4xf32>
    %111 = arith.addf %90, %110 : vector<128x4xf32>
    %c0_106 = arith.constant 0 : index
    %c0_107 = arith.constant 0 : index
    %112 = vector.load %arg10[%c0_106, %c0_107] : memref<1x4xf32, #tpu.memory_space<vmem>>, vector<1x4xf32>
    %113 = vector.broadcast %112 : vector<1x4xf32> to vector<128x4xf32>
    %114 = arith.mulf %111, %113 : vector<128x4xf32>
    %c0_108 = arith.constant 0 : index
    %c0_109 = arith.constant 0 : index
    %115 = vector.load %arg11[%c0_108, %c0_109] : memref<1x4xf32, #tpu.memory_space<vmem>>, vector<1x4xf32>
    %116 = vector.broadcast %115 : vector<1x4xf32> to vector<128x4xf32>
    %117 = arith.addf %114, %116 : vector<128x4xf32>
    %cst_110 = arith.constant 0.000000e+00 : f32
    %118 = vector.broadcast %cst_110 : f32 to vector<128x4xf32>
    %119 = arith.maximumf %117, %118 : vector<128x4xf32>
    %120 = arith.truncf %119 : vector<128x4xf32> to vector<128x4xbf16>
    %c0_111 = arith.constant 0 : index
    %c0_112 = arith.constant 0 : index
    %121 = vector.load %arg7[%c0_111, %c0_112] : memref<4x16xbf16, #tpu.memory_space<vmem>>, vector<4x16xbf16>
    %cst_113 = arith.constant dense<0.000000e+00> : vector<128x16xf32>
    %122 = tpu.matmul %120, %121, %cst_113 {dimension_numbers = #tpu.dot_dimension_numbers<[1], [0], [0], [1], [0, 0, 1, 1], [], []>} : vector<128x4xbf16>, vector<4x16xbf16>, vector<128x16xf32> -> vector<128x16xf32>
    %c0_114 = arith.constant 0 : index
    %c0_115 = arith.constant 0 : index
    %123 = vector.load %arg12[%c0_114, %c0_115] : memref<1x16xf32, #tpu.memory_space<vmem>>, vector<1x16xf32>
    %124 = vector.broadcast %123 : vector<1x16xf32> to vector<128x16xf32>
    %125 = arith.mulf %122, %124 : vector<128x16xf32>
    %c0_116 = arith.constant 0 : index
    %c0_117 = arith.constant 0 : index
    %126 = vector.load %arg13[%c0_116, %c0_117] : memref<1x16xf32, #tpu.memory_space<vmem>>, vector<1x16xf32>
    %127 = vector.broadcast %126 : vector<1x16xf32> to vector<128x16xf32>
    %128 = arith.addf %125, %127 : vector<128x16xf32>
    %c0_118 = arith.constant 0 : index
    %c0_119 = arith.constant 0 : index
    %c0_120 = arith.constant 0 : index
    %c0_121 = arith.constant 0 : index
    %129 = vector.load %arg2[%c0_118, %c0_119, %c0_120, %c0_121] : memref<1x8x16x16xbf16, #tpu.memory_space<vmem>>, vector<1x8x16x16xbf16>
    %130 = vector.shape_cast %129 : vector<1x8x16x16xbf16> to vector<8x16x16xbf16>
    %131 = vector.shape_cast %130 : vector<8x16x16xbf16> to vector<128x16xbf16>
    %132 = arith.extf %131 : vector<128x16xbf16> to vector<128x16xf32>
    %133 = arith.addf %128, %132 : vector<128x16xf32>
    %cst_122 = arith.constant 0.000000e+00 : f32
    %134 = vector.broadcast %cst_122 : f32 to vector<128x16xf32>
    %135 = arith.maximumf %133, %134 : vector<128x16xf32>
    %136 = vector.shape_cast %135 : vector<128x16xf32> to vector<8x16x16xf32>
    %c0_123 = arith.constant 0 : index
    %c0_124 = arith.constant 0 : index
    %c0_125 = arith.constant 0 : index
    %c0_126 = arith.constant 0 : index
    %137 = vector.load %arg14[%c0_123, %c0_124, %c0_125, %c0_126] : memref<1x8x16x16xf32, #tpu.memory_space<vmem>>, vector<1x8x16x16xf32>
    %138 = vector.shape_cast %137 : vector<1x8x16x16xf32> to vector<8x16x16xf32>
    %139 = vector.shape_cast %136 : vector<8x16x16xf32> to vector<1x8x16x16xf32>
    tpu.vector_store %arg14[%c0_123, %c0_124, %c0_125, %c0_126], %139 {strides = array<i32>} : memref<1x8x16x16xf32, #tpu.memory_space<vmem>>, vector<1x8x16x16xf32>,
    return
  }
  func.func @transform_0(%arg0: i32, %arg1: i32) -> (i32, i32, i32, i32) {
    %c0_i32 = arith.constant 0 : i32
    %c0_i32_0 = arith.constant 0 : i32
    %c0_i32_1 = arith.constant 0 : i32
    return %arg0, %arg1, %c0_i32, %c0_i32_0 : i32, i32, i32, i32
  }
  func.func @transform_1(%arg0: i32, %arg1: i32) -> (i32, i32, i32, i32) {
    %c8_i32 = arith.constant 8 : i32
    %0 = arith.muli %arg1, %c8_i32 : i32
    %c1_i32 = arith.constant 1 : i32
    %1 = arith.subi %0, %c1_i32 : i32
    %c0_i32 = arith.constant 0 : i32
    %2 = arith.maxsi %1, %c0_i32 : i32
    %c0_i32_0 = arith.constant 0 : i32
    %c0_i32_1 = arith.constant 0 : i32
    %c0_i32_2 = arith.constant 0 : i32
    return %arg0, %2, %c0_i32_0, %c0_i32_1 : i32, i32, i32, i32
  }
  func.func @transform_2(%arg0: i32, %arg1: i32) -> (i32, i32, i32, i32) {
    %c8_i32 = arith.constant 8 : i32
    %0 = arith.muli %arg1, %c8_i32 : i32
    %c8_i32_0 = arith.constant 8 : i32
    %1 = arith.addi %0, %c8_i32_0 : i32
    %c15_i32 = arith.constant 15 : i32
    %2 = arith.minsi %1, %c15_i32 : i32
    %c0_i32 = arith.constant 0 : i32
    %c0_i32_1 = arith.constant 0 : i32
    %c0_i32_2 = arith.constant 0 : i32
    return %arg0, %2, %c0_i32, %c0_i32_1 : i32, i32, i32, i32
  }
  func.func @transform_3(%arg0: i32, %arg1: i32) -> (i32, i32) {
    %c0_i32 = arith.constant 0 : i32
    %c0_i32_0 = arith.constant 0 : i32
    %c0_i32_1 = arith.constant 0 : i32
    return %c0_i32, %c0_i32_0 : i32, i32
  }
  func.func @transform_4(%arg0: i32, %arg1: i32) -> (i32, i32, i32, i32) {
    %c0_i32 = arith.constant 0 : i32
    %c0_i32_0 = arith.constant 0 : i32
    %c0_i32_1 = arith.constant 0 : i32
    %c0_i32_2 = arith.constant 0 : i32
    %c0_i32_3 = arith.constant 0 : i32
    return %c0_i32, %c0_i32_0, %c0_i32_1, %c0_i32_2 : i32, i32, i32, i32
  }
  func.func @transform_5(%arg0: i32, %arg1: i32) -> (i32, i32) {
    %c0_i32 = arith.constant 0 : i32
    %c0_i32_0 = arith.constant 0 : i32
    %c0_i32_1 = arith.constant 0 : i32
    return %c0_i32, %c0_i32_0 : i32, i32
  }
  func.func @transform_6(%arg0: i32, %arg1: i32) -> (i32, i32) {
    %c0_i32 = arith.constant 0 : i32
    %c0_i32_0 = arith.constant 0 : i32
    %c0_i32_1 = arith.constant 0 : i32
    return %c0_i32, %c0_i32_0 : i32, i32
  }
  func.func @transform_7(%arg0: i32, %arg1: i32) -> (i32, i32) {
    %c0_i32 = arith.constant 0 : i32
    %c0_i32_0 = arith.constant 0 : i32
    %c0_i32_1 = arith.constant 0 : i32
    return %c0_i32, %c0_i32_0 : i32, i32
  }
  func.func @transform_8(%arg0: i32, %arg1: i32) -> (i32, i32) {
    %c0_i32 = arith.constant 0 : i32
    %c0_i32_0 = arith.constant 0 : i32
    %c0_i32_1 = arith.constant 0 : i32
    return %c0_i32, %c0_i32_0 : i32, i32
  }
  func.func @transform_9(%arg0: i32, %arg1: i32) -> (i32, i32) {
    %c0_i32 = arith.constant 0 : i32
    %c0_i32_0 = arith.constant 0 : i32
    %c0_i32_1 = arith.constant 0 : i32
    return %c0_i32, %c0_i32_0 : i32, i32
  }
  func.func @transform_10(%arg0: i32, %arg1: i32) -> (i32, i32) {
    %c0_i32 = arith.constant 0 : i32
    %c0_i32_0 = arith.constant 0 : i32
    %c0_i32_1 = arith.constant 0 : i32
    return %c0_i32, %c0_i32_0 : i32, i32
  }
  func.func @transform_11(%arg0: i32, %arg1: i32) -> (i32, i32) {
    %c0_i32 = arith.constant 0 : i32
    %c0_i32_0 = arith.constant 0 : i32
    %c0_i32_1 = arith.constant 0 : i32
    return %c0_i32, %c0_i32_0 : i32, i32
  }
  func.func @transform_12(%arg0: i32, %arg1: i32) -> (i32, i32, i32, i32) {
    %c0_i32 = arith.constant 0 : i32
    %c0_i32_0 = arith.constant 0 : i32
    %c0_i32_1 = arith.constant 0 : i32
    return %arg0, %arg1, %c0_i32, %c0_i32_0 : i32, i32, i32, i32
  }
}

</mosaic_0001>

<bundles_post_ra>
// kernel: bottleneck_forward.1
= control target key start
LH: loop header
LB: loop body
LE: loop exit
PB: predicated region body
PF: predicated region fallthrough
CT: control target
= control target key end

     0   :  { %s3573_s21 = smov 0   ;;  %s3575_s22 = smov 0   ;;  %s4291_s0 = inlined_call_operand.vmem [shape: bf16[2,16,16,16], index: 0, kind: input, shape index: {}, may-alias: {0,1,2}]   ;;  %s4292_s1 = inlined_call_operand.vmem [shape: bf16[2,16,16,16], index: 1, kind: input, shape index: {}, may-alias: {0,1,2}]   ;;  %s4293_s2 = inlined_call_operand.vmem [shape: bf16[2,16,16,16], index: 2, kind: input, shape index: {}, may-alias: {0,1,2}]   ;;  %s4294_s3 = inlined_call_operand.vmem [shape: bf16[16,4], index: 3, kind: input, shape index: {}]   ;;  %s4295_s4 = inlined_call_operand.vmem [shape: bf16[3,3,4,4], index: 4, kind: input, shape index: {}]   ;;  %s4296_s5 = inlined_call_operand.vmem [shape: bf16[4,16], index: 5, kind: input, shape index: {}]   ;;  %s4297_s6 = inlined_call_operand.vmem [shape: f32[1,4], index: 6, kind: input, shape index: {}]   ;;  %s4298_s7 = inlined_call_operand.vmem [shape: f32[1,4], index: 7, kind: input, shape index: {}]   ;;  %s4299_s8 = inlined_call_operand.vmem [shape: f32[1,4], index: 8, kind: input, shape index: {}]   ;;  %s4300_s9 = inlined_call_operand.vmem [shape: f32[1,4], index: 9, kind: input, shape index: {}]   ;;  %s4301_s10 = inlined_call_operand.vmem [shape: f32[1,16], index: 10, kind: input, shape index: {}]   ;;  %s4302_s11 = inlined_call_operand.vmem [shape: f32[1,16], index: 11, kind: input, shape index: {}]   ;;  %s4303_s12 = inlined_call_operand.vmem [shape: f32[2,16,16,16], index: 12, kind: output, shape index: {}]  }
   0x1   :  { %4304 = sst [smem:[#allocation8_spill]] %s4291_s0  ;;  %s3577_s23 = smov 0  }
   0x2   :  { %4305 = sst [smem:[#allocation9_spill]] %s4294_s3  ;;  %s3579_s24 = smov 0  }
   0x3   :  { %s3581_s25 = smov 0  }
   0x4 LB: > { %s31_s26 = sadd.s32 1, %s3496_s23  ;;  %s34_s27 = sadd.s32 1, %s3500_s24  ;;  %s3504_s25 = sphi %s3581_s25, %s22_s25   ;;  %s3500_s24 = sphi %s3579_s24, %s4322_s24   ;;  %s3496_s23 = sphi %s3577_s23, %s4321_s23   ;;  %s3492_s22 = sphi %s3575_s22, %s4320_s22   ;;  %s3488_s21 = sphi %s3573_s21, %s4319_s21  }
   0x5   : > { %p32_p0 = scmp.ge.s32.totalorder %s31_s26, 2  ;;  %p2904_p1 = scmp.ge.s32.totalorder %s3504_s25, 1 }
   0x6   : > { %p448_p2 = scmp.lt.s32.totalorder %s3504_s25, 5 }
   0x7   : > { %s4324_s26 = smov (%p32_p0, %s31_s26), 0  ;;  %s4326_s27 = smov (!%p32_p0, %s34_s27), %s3500_s24 }
   0x8   : > { %4306 = sst [smem:[#allocation3_spill]] %s4324_s26  ;;  %p449_p3 = pnand %p2904_p1, %p448_p2 }
   0x9   : > { %p36_p4 = scmp.ge.s32.totalorder %s4326_s27, 2 }
   0xa   : > { %452 = sbr.rel (%p449_p3) target bundleno = 828 (0x33c), region = 68 }
   0xb   : > { %s4328_s27 = smov (%p36_p4, %s4326_s27), 0 }
   0xc   : > { %4307 = sst [smem:[#allocation4_spill]] %s4328_s27 }
   0xf   : > { %s4308_s3 = sld [smem:[#allocation9_spill]]  ;;  %s2905_s30 = sshll.u32 %s3488_s21, 3  ;;  %v3506_v1 = vmov 0.0   ;;  %vm649_vm0 = vcmask 130048   ;;  %vm3507_vm1 = vmmov 0   ;;  %vm957_vm2 = vcmask 24576  }
  0x10   : > { %p527_p5 = scmp.lt.s32.totalorder %s3492_s22, 1  ;;  %p529_p6 = scmp.lt.s32.totalorder %s2905_s30, 15  ;;  %958 = vst.msk [vmem:[#allocation2] sm:$0x1] %vm957_vm2, %v3506_v1  ;;  %959 = vst.msk [vmem:[#allocation2 + $0x18] sm:$0x1] %vm957_vm2, %v3506_v1 }
  0x11   : > { %s2910_s13 = sadd.s32 4294967295, %s2905_s30  ;;  %s555_s14 = sadd.s32 8, %s2905_s30  ;;  %960 = vst.msk [vmem:[#allocation2 + $0x30] sm:$0x1] %vm957_vm2, %v3506_v1  ;;  %961 = vst.msk [vmem:[#allocation2 + $0x48] sm:$0x1] %vm957_vm2, %v3506_v1 }
  0x12   : > { %s4330_s22 = smov (!%p527_p5, %s3492_s22), 1  ;;  %s4332_s30 = smov (!%p529_p6, %s2905_s30), 15  ;;  %962 = vst.msk [vmem:[#allocation2 + $0x60] sm:$0x1] %vm957_vm2, %v3506_v1  ;;  %963 = vst.msk [vmem:[#allocation2 + $0x78] sm:$0x1] %vm957_vm2, %v3506_v1 }
  0x13   : > { %s3610_s15 = sshll.u32 %s4330_s22, 5  ;;  %s2906_s16 = sshll.u32 %s4332_s30, 1  ;;  %964 = vst.msk [vmem:[#allocation2 + $0x90] sm:$0x1] %vm957_vm2, %v3506_v1  ;;  %965 = vst.msk [vmem:[#allocation2 + $0xa8] sm:$0x1] %vm957_vm2, %v3506_v1 }
  0x14   : > { %p539_p7 = scmp.gt.s32.totalorder %s2910_s13, 0  ;;  %s3613_s17 = sadd.s32 %s3610_s15, %s2906_s16  ;;  %966 = vst.msk [vmem:[#allocation2 + $0xc0] sm:$0x1] %vm957_vm2, %v3506_v1  ;;  %967 = vst.msk [vmem:[#allocation2 + $0xd8] sm:$0x1] %vm957_vm2, %v3506_v1  ;;  %vm1076_vm3 = vcmask 1041408  }
  0x15   : > { %v3455_v0 = vld [vmem:[%s4308_s3] sm:$0xff]   ;;  %p3615_p8 = scmp.lt.s32.totalorder %s555_s14, 15  ;;  %s2908_s19 = sshll.u32 %s3613_s17, 2  ;;  %968 = vst.msk [vmem:[#allocation2 + $0x11] sm:$0x1] %vm957_vm2, %v3506_v1  ;;  %vm978_vm4 = vcmask 31744  }
  0x16   : > { %3401 = vmatprep.subr.bf16.mxu1 %v3455_v0  ;;  %3191 = vmatprep.subr.bf16.mxu0 %v3455_v0  ;;  %p2911_p9 = scmp.lt.s32.totalorder %s2910_s13, 15  ;;  %s4310_s0 = sld [smem:[#allocation8_spill]]  ;;  %969 = vst.msk [vmem:[#allocation2 + $0x29] sm:$0x1] %vm957_vm2, %v3506_v1  ;;  %970 = vst.msk [vmem:[#allocation2 + $0x41] sm:$0x1] %vm957_vm2, %v3506_v1 }
  0x17   : > { %3402 = vmatpush3.bf16.msra.mxu1 %v3455_v0  ;;  %3192 = vmatpush3.bf16.msra.mxu0 %v3455_v0  ;;  %s4334_s13 = smov (!%p539_p7, %s2910_s13), 0  ;;  %s4336_s14 = smov (!%p3615_p8, %s555_s14), 15  ;;  %971 = vst.msk [vmem:[#allocation2 + $0x59] sm:$0x1] %vm957_vm2, %v3506_v1  ;;  %972 = vst.msk [vmem:[#allocation2 + $0x71] sm:$0x1] %vm957_vm2, %v3506_v1 }
  0x18   : > { %3209 = vmatprep.subr.bf16.mxu1 %v3506_v1  ;;  %s4338_s13 = smov (!%p2911_p9, %s4334_s13), 15  ;;  %s4340_s14 = smov (!%p3615_p8, %s4336_s14), 15  ;;  %973 = vst.msk [vmem:[#allocation2 + $0x89] sm:$0x1] %vm957_vm2, %v3506_v1  ;;  %974 = vst.msk [vmem:[#allocation2 + $0xa1] sm:$0x1] %vm957_vm2, %v3506_v1 }
  0x19   : > { %s2916_s22 = sshll.u32 %s4338_s13, 1  ;;  %s2923_s16 = sshll.u32 %s4340_s14, 1  ;;  %975 = vst.msk [vmem:[#allocation2 + $0xb9] sm:$0x1] %vm957_vm2, %v3506_v1  ;;  %976 = vst.msk [vmem:[#allocation2 + $0xd1] sm:$0x1] %vm957_vm2, %v3506_v1 }
  0x1a   : > { %s547_s30 = sadd.s32 %s2916_s22, %s3610_s15  ;;  %s564_s18 = sadd.s32 %s2923_s16, %s3610_s15  ;;  %977 = vst.msk [vmem:[#allocation2 + $0xe9] sm:$0x1] %vm957_vm2, %v3506_v1  ;;  %v2953_v12 = vld [vmem:[%s4295_s4 + $0x2] sm:$0x3]  ;;  %v1025_v13 = vld [vmem:[%s4295_s4] sm:$0x3] }
  0x1b   : > { %v1078_v14 = vsel %vm1076_vm3, %v2953_v12, 0  ;;  %3404 = vmatprep.subr.msk.bf16.mxu0 %vm1076_vm3, %v1025_v13  ;;  %v1202_v15 = vsel %vm1076_vm3, %v1025_v13, 0  ;;  %v3713_v16 = vld [vmem:[%s4295_s4 + $0x4] sm:$0x3]  ;;  %v3720_v17 = vld [vmem:[%s4295_s4 + $0x8] sm:$0x3] }
  0x1c   : > { %s3623_s29 = scalar_lea.vmem %s4310_s0, %s2908_s19  ;;  %s2918_s19 = sshll.u32 %s547_s30, 2  ;;  %v3727_v18 = vld [vmem:[%s4297_s6] ss:$0 sm:$0xff] }
  0x1d   : > { %v3456_v2 = vld [vmem:[%s3623_s29 + $0x30] sm:$0xff]   ;;  %v3457_v3 = vld [vmem:[%s3623_s29 + $0x38] sm:$0xff]   ;;  %v3458_v4 = vld [vmem:[%s3623_s29] sm:$0xff]   ;;  %s549_s13 = scalar_lea.vmem %s4292_s1, %s2918_s19  ;;  %s2925_s0 = sshll.u32 %s564_s18, 2 }
  0x1e   : > { %3205 = vmatprep.mubr.msk.bf16.mxu1 %vm649_vm0, %v3456_v2  ;;  %v3459_v5 = vld [vmem:[%s3623_s29 + $0x8] sm:$0xff]   ;;  %3193 = vmatprep.mubr.msk.bf16.mxu0 %vm649_vm0, %v3458_v4  ;;  %v3461_v6 = vld [vmem:[%s3623_s29 + $0x10] sm:$0xff]   ;;  %v3460_v7 = vld [vmem:[%s549_s13] sm:$0xff]   ;;  %s566_s26 = scalar_lea.vmem %s4293_s2, %s2925_s0  ;;  %p831_p10 = scmp.gt.s32.totalorder %s3488_s21, 0 }
  0x1f   : > { %3206 = vmatmul.mubr.msk.bf16.vlgmr.msra.gmra.mxu1 %vm649_vm0, %v3457_v3  ;;  %3194 = vmatmul.mubr.msk.bf16.vlgmr.msra.gmra.mxu0 %vm649_vm0, %v3459_v5  ;;  %v3462_v8 = vld [vmem:[%s3623_s29 + $0x18] sm:$0xff]   ;;  %v3463_v9 = vld [vmem:[%s3623_s29 + $0x20] sm:$0xff]   ;;  %v3464_v11 = vld [vmem:[%s3623_s29 + $0x28] sm:$0xff]   ;;  %p834_p11 = scmp.lt.s32.totalorder %s3488_s21, 1  ;;  %s2929_s22 = sshll.u32 %s3613_s17, 3 }
  0x20   : > { %3210 = vmatpush3.bf16.msra.mxu1 %v3455_v0  ;;  %3211 = vmatprep.mubr.msk.bf16.mxu1 %vm3507_vm1, %v3506_v1  ;;  %v3465_v10 = vld [vmem:[%s566_s26] sm:$0xff]   ;;  %s3739_s28 = scalar_select %p831_p10, 1, 0 }
  0x21   : > { %3197 = vmatprep.mubr.msk.bf16.mxu0 %vm649_vm0, %v3461_v6  ;;  %3215 = vmatprep.subr.bf16.mxu1 %v3506_v1  ;;  %v3732_v19 = vld [vmem:[%s4298_s7] ss:$0 sm:$0xff]  ;;  %s3770_s0 = scalar_select %p834_p11, 1, 0 }
  0x22   : > { %3240 = vmatpush3.bf16.msra.mxu0 %v1202_v15  ;;  %s833_s13 = scvt.s32.f32 %s3739_s28  ;;  %s4209_s19 = scalar_lea.vmem %s4303_s12, %s2929_s22 }
  0x23   : > { %3406 = vmatprep.subr.msk.bf16.mxu0 %vm1076_vm3, %v3720_v17  ;;  %s836_s21 = scvt.s32.f32 %s3770_s0 }
  0x24   : > { %v894_v57 = vstv %s833_s13 }
  0x27   : > { %3212 = vmatmul.mubr.msk.bf16.vlgmr.msra.gmra.mxu1 %vm649_vm0, %v3460_v7  ;;  %3198 = vmatmul.mubr.msk.bf16.gmra.mxu0 %vm649_vm0, %v3462_v8 }
  0x28   : > { %3216 = vmatpush3.bf16.msra.mxu1 %v3455_v0  ;;  %3217 = vmatprep.mubr.msk.bf16.mxu1 %vm3507_vm1, %v3506_v1 }
  0x29   : > { %3201 = vmatprep.mubr.msk.bf16.mxu0 %vm649_vm0, %v3463_v9  ;;  %3403 = vmatprep.subr.msk.bf16.mxu1 %vm1076_vm3, %v2953_v12 }
  0x2f   : > { %3218 = vmatmul.mubr.msk.bf16.vlgmr.msra.gmra.mxu1 %vm649_vm0, %v3465_v10  ;;  %3202 = vmatmul.mubr.msk.bf16.gmra.mxu0 %vm649_vm0, %v3464_v11 }
  0x30   : > { %3222 = vmatpush3.bf16.msra.mxu1 %v1078_v14 }
  0x31   : > { %3405 = vmatprep.subr.msk.bf16.mxu1 %vm1076_vm3, %v3713_v16 }
  0xdf   : > { %v3207_v20 = vpop.f32.mrf.mxu1  ;;  %v3195_v23 = vpop.f32.mrf.mxu0 }
  0xe0   : > { %v791_v21 = vmul.f32 %v3207_v20, %v3727_v18  ;;  %v779_v26 = vmul.f32 %v3195_v23, %v3727_v18 }
  0xe1   : > { %v756_v22 = vpop.f32.mrf.mxu1  ;;  %v708_v28 = vpop.f32.mrf.mxu0 }
  0xe2   : > { %v813_v24 = vadd.f32 %v3732_v19, %v791_v21  ;;  %v789_v25 = vmul.f32 %v3727_v18, %v756_v22  ;;  %v801_v31 = vadd.f32 %v3732_v19, %v779_v26  ;;  %v777_v33 = vmul.f32 %v3727_v18, %v708_v28 }
  0xe3   : > { %v3208_v27 = vpop.f32.mrf.mxu1  ;;  %v3196_v35 = vpop.f32.mrf.mxu0 }
  0xe4   : > { %v829_v29 = vmax.f32 %v813_v24, 0.0  ;;  %v811_v30 = vadd.f32 %v3732_v19, %v789_v25  ;;  %v792_v32 = vmul.f32 %v3208_v27, %v3727_v18  ;;  %v817_v37 = vmax.f32 %v801_v31, 0.0 }
  0xe5   : > { %v759_v34 = vpop.f32.mrf.mxu1  ;;  %v799_v40 = vadd.f32 %v3732_v19, %v777_v33  ;;  %v780_v41 = vmul.f32 %v3196_v35, %v3727_v18  ;;  %v711_v43 = vpop.f32.mrf.mxu0  ;;  %v954_v33 = vstv %s836_s21 }
  0xe6   : > { %996 = vst.msk [vmem:[#allocation2 + $0xc1] sm:$0xff] %vm978_vm4, %v829_v29  ;;  %v827_v36 = vmax.f32 %v811_v30, 0.0  ;;  %v814_v38 = vadd.f32 %v3732_v19, %v792_v32  ;;  %v790_v39 = vmul.f32 %v3727_v18, %v759_v34  ;;  %984 = vst.msk [vmem:[#allocation2 + $0x31] sm:$0xff] %vm978_vm4, %v817_v37  ;;  %v778_v47 = vmul.f32 %v3727_v18, %v711_v43 }
  0xe7   : > { %v881_v42 = vpop.f32.mrf.mxu1  ;;  %v815_v48 = vmax.f32 %v799_v40, 0.0  ;;  %v802_v49 = vadd.f32 %v3732_v19, %v780_v41  ;;  %v3199_v51 = vpop.f32.mrf.mxu0 }
  0xe8   : > { %994 = vst.msk [vmem:[#allocation2 + $0xa9] sm:$0xff] %vm978_vm4, %v827_v36  ;;  %v830_v44 = vmax.f32 %v814_v38, 0.0  ;;  %v812_v45 = vadd.f32 %v3732_v19, %v790_v39  ;;  %v888_v46 = vmul.f32 %v3727_v18, %v881_v42  ;;  %v800_v54 = vadd.f32 %v3732_v19, %v778_v47 }
  0xe9   : > { %v3213_v50 = vpop.f32.mrf.mxu1  ;;  %v783_v55 = vmul.f32 %v3199_v51, %v3727_v18  ;;  %982 = vst.msk [vmem:[#allocation2 + $0x19] sm:$0xff] %vm978_vm4, %v815_v48  ;;  %v818_v56 = vmax.f32 %v802_v49, 0.0  ;;  %v724_v59 = vpop.f32.mrf.mxu0 }
  0xea   : > { %997 = vst.msk [vmem:[#allocation2 + $0xc9] sm:$0xff] %vm978_vm4, %v830_v44  ;;  %v828_v52 = vmax.f32 %v812_v45, 0.0  ;;  %v890_v53 = vadd.f32 %v3732_v19, %v888_v46  ;;  %v816_v61 = vmax.f32 %v800_v54, 0.0  ;;  %v781_v0 = vmul.f32 %v3727_v18, %v724_v59 }
  0xeb   : > { %v884_v58 = vpop.f32.mrf.mxu1  ;;  %v805_v62 = vadd.f32 %v3732_v19, %v783_v55  ;;  %985 = vst.msk [vmem:[#allocation2 + $0x39] sm:$0xff] %vm978_vm4, %v818_v56  ;;  %v3200_v2 = vpop.f32.mrf.mxu0 }
  0xec   : > { %995 = vst.msk [vmem:[#allocation2 + $0xb1] sm:$0xff] %vm978_vm4, %v828_v52  ;;  %v892_v60 = vmax.f32 %v890_v53, 0.0  ;;  %v889_v63 = vmul.f32 %v3727_v18, %v884_v58  ;;  %983 = vst.msk [vmem:[#allocation2 + $0x21] sm:$0xff] %vm978_vm4, %v816_v61  ;;  %v784_v6 = vmul.f32 %v3200_v2, %v3727_v18  ;;  %v803_v7 = vadd.f32 %v3732_v19, %v781_v0 }
  0xed   : > { %v3214_v1 = vpop.f32.mrf.mxu1  ;;  %v821_v4 = vmax.f32 %v805_v62, 0.0  ;;  %v727_v8 = vpop.f32.mrf.mxu0  ;;  %v1030_v45 = vld [vmem:[#allocation2 + $0x31] sm:$0xff] }
  0xee   : > { %v895_v3 = vmul.f32 %v894_v57, %v892_v60  ;;  %v891_v5 = vadd.f32 %v3732_v19, %v889_v63  ;;  %v806_v11 = vadd.f32 %v3732_v19, %v784_v6  ;;  %v782_v12 = vmul.f32 %v3727_v18, %v727_v8  ;;  %v1005_v59 = vld [vmem:[#allocation2 + $0x30] sm:$0xff] }
  0xef   : > { %v941_v9 = vpop.f32.mrf.mxu1  ;;  %988 = vst.msk [vmem:[#allocation2 + $0x61] sm:$0xff] %vm978_vm4, %v821_v4  ;;  %v819_v14 = vmax.f32 %v803_v7, 0.0  ;;  %v3203_v15 = vpop.f32.mrf.mxu0  ;;  %v1352_v63 = vsel %vm1076_vm3, %v3713_v16, 0  ;;  %v1544_v1 = vsel %vm1076_vm3, %v3720_v17, 0  ;;  %v2979_v16 = vld [vmem:[%s4295_s4 + $0x6] sm:$0x3] }
  0xf0   : > { %979 = vst.msk [vmem:[#allocation2 + $0x1] sm:$0xff] %vm978_vm4, %v895_v3  ;;  %v893_v10 = vmax.f32 %v891_v5, 0.0  ;;  %v948_v13 = vmul.f32 %v3727_v18, %v941_v9  ;;  %v822_v22 = vmax.f32 %v806_v11, 0.0  ;;  %v804_v23 = vadd.f32 %v3732_v19, %v782_v12  ;;  %v1028_v43 = vld [vmem:[#allocation2 + $0x19] sm:$0xff]  ;;  %v2997_v3 = vld [vmem:[%s4295_s4 + $0xa] sm:$0x3] }
  0xf1   : > { %v3219_v20 = vpop.f32.mrf.mxu1  ;;  %v787_v24 = vmul.f32 %v3203_v15, %v3727_v18  ;;  %986 = vst.msk [vmem:[#allocation2 + $0x49] sm:$0xff] %vm978_vm4, %v819_v14  ;;  %v740_v25 = vpop.f32.mrf.mxu0  ;;  %v1003_v44 = vld [vmem:[#allocation2 + $0x18] sm:$0xff] }
  0xf2   : > { %v896_v21 = vmul.f32 %v894_v57, %v893_v10  ;;  %v950_v26 = vadd.f32 %v3732_v19, %v948_v13  ;;  %989 = vst.msk [vmem:[#allocation2 + $0x69] sm:$0xff] %vm978_vm4, %v822_v22  ;;  %v820_v28 = vmax.f32 %v804_v23, 0.0  ;;  %v785_v30 = vmul.f32 %v3727_v18, %v740_v25  ;;  %v1031_v46 = vld [vmem:[#allocation2 + $0x39] sm:$0xff] }
  0xf3   : > { %v944_v27 = vpop.f32.mrf.mxu1  ;;  %v809_v29 = vadd.f32 %v3732_v19, %v787_v24  ;;  %v3204_v31 = vpop.f32.mrf.mxu0  ;;  %v1029_v51 = vld [vmem:[#allocation2 + $0x21] sm:$0xff]  ;;  %v1006_v60 = vld [vmem:[#allocation2 + $0x38] sm:$0xff] }
  0xf4   : > { %980 = vst.msk [vmem:[#allocation2 + $0x9] sm:$0xff] %vm978_vm4, %v896_v21  ;;  %v952_v32 = vmax.f32 %v950_v26, 0.0  ;;  %987 = vst.msk [vmem:[#allocation2 + $0x51] sm:$0xff] %vm978_vm4, %v820_v28  ;;  %v807_v36 = vadd.f32 %v3732_v19, %v785_v30  ;;  %v788_v37 = vmul.f32 %v3204_v31, %v3727_v18  ;;  %v949_v47 = vmul.f32 %v3727_v18, %v944_v27  ;;  %v1004_v52 = vld [vmem:[#allocation2 + $0x20] sm:$0xff] }
  0xf5   : > { %v3220_v34 = vpop.f32.mrf.mxu1  ;;  %v825_v35 = vmax.f32 %v809_v29, 0.0  ;;  %v743_v38 = vpop.f32.mrf.mxu0  ;;  %v3802_v61 = vpack.c.bf16 %v1029_v51, %v1028_v43  ;;  %v3804_v62 = vpack.c.bf16 %v1004_v52, %v1003_v44  ;;  %v3819_v2 = vpack.c.bf16 %v1006_v60, %v1005_v59  ;;  %v1305_v43 = vld [vmem:[#allocation2 + $0x32] sm:$0xff]  ;;  %v1306_v44 = vld [vmem:[#allocation2 + $0x3a] sm:$0xff] }
  0xf6   : > { %v823_v39 = vmax.f32 %v807_v36, 0.0  ;;  %v810_v40 = vadd.f32 %v3732_v19, %v788_v37  ;;  %v786_v41 = vmul.f32 %v3727_v18, %v743_v38  ;;  %v955_v42 = vmul.f32 %v954_v33, %v952_v32  ;;  %v1034_v5 = vld [vmem:[#allocation2 + $0x61] sm:$0xff]  ;;  %v1041_v32 = vld [vmem:[#allocation2 + $0xb1] sm:$0xff]  ;;  %v1040_v36 = vld [vmem:[#allocation2 + $0xa9] sm:$0xff] }
  0xf7   : > { %992 = vst.msk [vmem:[#allocation2 + $0x91] sm:$0xff] %vm978_vm4, %v825_v35  ;;  %v1026_v50 = vld [vmem:[#allocation2 + $0x1] sm:$0xff]  ;;  %v951_v56 = vadd.f32 %v3732_v19, %v949_v47  ;;  %v3866_v38 = vpack.c.bf16 %v1041_v32, %v1040_v36  ;;  %v3878_v47 = vpack.c.bf16 %v1306_v44, %v1305_v43 }
  0xf8   : > { %990 = vst.msk [vmem:[#allocation2 + $0x79] sm:$0xff] %vm978_vm4, %v823_v39  ;;  %v826_v48 = vmax.f32 %v810_v40, 0.0  ;;  %v808_v49 = vadd.f32 %v3732_v19, %v786_v41  ;;  %999 = vst.msk [vmem:[#allocation2 + $0xd9] sm:$0xff] %vm978_vm4, %v955_v42  ;;  %v1001_v54 = vld [vmem:[#allocation2] sm:$0xff]  ;;  %v3811_v19 = vpack.c.bf16 %v1031_v46, %v1030_v45  ;;  %v1032_v17 = vld [vmem:[#allocation2 + $0x49] sm:$0xff]  ;;  %v1668_v46 = vsel %vm1076_vm3, %v2979_v16, 0 }
  0xf9   : > { %v953_v0 = vmax.f32 %v951_v56, 0.0  ;;  %v1007_v7 = vld [vmem:[#allocation2 + $0x48] sm:$0xff]  ;;  %v1009_v10 = vld [vmem:[#allocation2 + $0x60] sm:$0xff] }
  0xfa   : > { %993 = vst.msk [vmem:[#allocation2 + $0x99] sm:$0xff] %vm978_vm4, %v826_v48  ;;  %v824_v57 = vmax.f32 %v808_v49, 0.0  ;;  %v1035_v9 = vld [vmem:[#allocation2 + $0x69] sm:$0xff]  ;;  %v1303_v41 = vld [vmem:[#allocation2 + $0x1a] sm:$0xff]  ;;  %v1818_v48 = vsel %vm1076_vm3, %v2997_v3, 0 }
  0xfb   : > { %v1027_v53 = vld [vmem:[#allocation2 + $0x9] sm:$0xff]  ;;  %v956_v4 = vmul.f32 %v954_v33, %v953_v0  ;;  %v1033_v6 = vld [vmem:[#allocation2 + $0x51] sm:$0xff]  ;;  %v3838_v14 = vpack.c.bf16 %v1035_v9, %v1034_v5  ;;  %v1481_v9 = vld [vmem:[#allocation2 + $0xc0] sm:$0xff] }
  0xfc   : > { %v1002_v55 = vld [vmem:[#allocation2 + $0x8] sm:$0xff]  ;;  %v1042_v58 = vpack.c.bf16 %v1027_v53, %v1026_v50  ;;  %991 = vst.msk [vmem:[#allocation2 + $0x81] sm:$0xff] %vm978_vm4, %v824_v57  ;;  %v1008_v8 = vld [vmem:[#allocation2 + $0x50] sm:$0xff]  ;;  %v3834_v12 = vpack.c.bf16 %v1033_v6, %v1032_v17 }
  0xfd   : > { %v1017_v18 = vpack.c.bf16 %v1002_v55, %v1001_v54  ;;  %1000 = vst.msk [vmem:[#allocation2 + $0xe1] sm:$0xff] %vm978_vm4, %v956_v4  ;;  %v1010_v11 = vld [vmem:[#allocation2 + $0x68] sm:$0xff]  ;;  %v3836_v13 = vpack.c.bf16 %v1008_v8, %v1007_v7  ;;  %v1016_v33 = vld [vmem:[#allocation2 + $0xb0] sm:$0xff] }
  0xfe   : > { %3223 = vmatprep.mubr.msk.bf16.mxu1 %vm978_vm4, %v1042_v58  ;;  %v3840_v15 = vpack.c.bf16 %v1010_v11, %v1009_v10  ;;  %v1038_v21 = vld [vmem:[#allocation2 + $0x91] sm:$0xff]  ;;  %v1301_v34 = vld [vmem:[#allocation2 + $0x2] sm:$0xff]  ;;  %v3007_v49 = vld [vmem:[%s4295_s4 + $0xe] sm:$0x3] }
  0xff   : > { %3241 = vmatprep.mubr.msk.bf16.mxu0 %vm978_vm4, %v1017_v18  ;;  %3224 = vmatmul.mubr.msk.bf16.vlgmr.msra.gmra.mxu1 %vm978_vm4, %v3802_v61  ;;  %v1036_v20 = vld [vmem:[#allocation2 + $0x79] sm:$0xff]  ;;  %v1013_v26 = vld [vmem:[#allocation2 + $0x90] sm:$0xff]  ;;  %v1015_v37 = vld [vmem:[#allocation2 + $0xa8] sm:$0xff]  ;;  %v2027_v17 = vsel %vm1076_vm3, %v3007_v49, 0 }
 0x100   : > { %3242 = vmatmul.mubr.msk.bf16.vlgmr.msra.gmra.mxu0 %vm978_vm4, %v3804_v62  ;;  %3258 = vmatpush3.bf16.msra.mxu1 %v1352_v63  ;;  %v1011_v23 = vld [vmem:[#allocation2 + $0x78] sm:$0xff]  ;;  %v1302_v35 = vld [vmem:[#allocation2 + $0xa] sm:$0xff]  ;;  %v3868_v39 = vpack.c.bf16 %v1016_v33, %v1015_v37  ;;  %v1304_v42 = vld [vmem:[#allocation2 + $0x22] sm:$0xff] }
 0x101   : > { %3227 = vmatprep.mubr.msk.bf16.mxu1 %vm978_vm4, %v3811_v19  ;;  %3245 = vmatprep.mubr.msk.bf16.mxu0 %vm978_vm4, %v3819_v2  ;;  %v1039_v25 = vld [vmem:[#allocation2 + $0x99] sm:$0xff]  ;;  %v1317_v40 = vpack.c.bf16 %v1302_v35, %v1301_v34  ;;  %v1318_v45 = vpack.c.bf16 %v1304_v42, %v1303_v41  ;;  %v3006_v50 = vld [vmem:[%s4295_s4 + $0xc] sm:$0x3]  ;;  %v1309_v53 = vld [vmem:[#allocation2 + $0x62] sm:$0xff] }
 0x102   : > { %3276 = vmatpush3.bf16.msra.mxu0 %v1544_v1  ;;  %3407 = vmatprep.subr.msk.bf16.mxu1 %vm1076_vm3, %v2979_v16  ;;  %v1014_v27 = vld [vmem:[#allocation2 + $0x98] sm:$0xff]  ;;  %v3854_v30 = vpack.c.bf16 %v1039_v25, %v1038_v21  ;;  %v1307_v51 = vld [vmem:[#allocation2 + $0x4a] sm:$0xff]  ;;  %v1507_v16 = vld [vmem:[#allocation2 + $0xc1] sm:$0xff]  ;;  %v2151_v5 = vsel %vm1076_vm3, %v3006_v50, 0 }
 0x103   : > { %3408 = vmatprep.subr.msk.bf16.mxu0 %vm1076_vm3, %v2997_v3  ;;  %v1037_v22 = vld [vmem:[#allocation2 + $0x81] sm:$0xff]  ;;  %v3856_v31 = vpack.c.bf16 %v1014_v27, %v1013_v26  ;;  %v1308_v52 = vld [vmem:[#allocation2 + $0x52] sm:$0xff]  ;;  %v1310_v54 = vld [vmem:[#allocation2 + $0x6a] sm:$0xff] }
 0x104   : > { %v1012_v24 = vld [vmem:[#allocation2 + $0x80] sm:$0xff]  ;;  %v3850_v28 = vpack.c.bf16 %v1037_v22, %v1036_v20  ;;  %v3896_v55 = vpack.c.bf16 %v1308_v52, %v1307_v51  ;;  %v3898_v56 = vpack.c.bf16 %v1310_v54, %v1309_v53  ;;  %v1313_v18 = vld [vmem:[#allocation2 + $0x92] sm:$0xff]  ;;  %v1315_v63 = vld [vmem:[#allocation2 + $0xaa] sm:$0xff] }
 0x105   : > { %v3852_v29 = vpack.c.bf16 %v1012_v24, %v1011_v23  ;;  %v1311_v57 = vld [vmem:[#allocation2 + $0x7a] sm:$0xff]  ;;  %v1312_v58 = vld [vmem:[#allocation2 + $0x82] sm:$0xff]  ;;  %v1316_v0 = vld [vmem:[#allocation2 + $0xb2] sm:$0xff] }
 0x106   : > { %v1314_v59 = vld [vmem:[#allocation2 + $0x9a] sm:$0xff]  ;;  %v3908_v60 = vpack.c.bf16 %v1312_v58, %v1311_v57  ;;  %v1508_v1 = vld [vmem:[#allocation2 + $0xc9] sm:$0xff]  ;;  %v1324_v3 = vpack.c.bf16 %v1316_v0, %v1315_v63 }
 0x107   : > { %3228 = vmatmul.mubr.msk.bf16.gmra.mxu1 %vm978_vm4, %v3834_v12  ;;  %v1516_v4 = vpack.c.bf16 %v1508_v1, %v1507_v16  ;;  %v3024_v6 = vld [vmem:[%s4295_s4 + $0x10] sm:$0x3]  ;;  %v1781_v7 = vld [vmem:[#allocation2 + $0xc2] sm:$0xff]  ;;  %v2264_v21 = vld [vmem:[#allocation2 + $0xda] sm:$0xff] }
 0x108   : > { %3246 = vmatmul.mubr.msk.bf16.gmra.mxu0 %vm978_vm4, %v3836_v13  ;;  %3231 = vmatprep.mubr.msk.bf16.mxu1 %vm978_vm4, %v3838_v14  ;;  %v1782_v8 = vld [vmem:[#allocation2 + $0xca] sm:$0xff]  ;;  %v2301_v20 = vsel %vm1076_vm3, %v3024_v6, 0  ;;  %v2265_v22 = vld [vmem:[#allocation2 + $0xe2] sm:$0xff]  ;;  %v2502_v24 = vld [vmem:[%s4296_s5] sm:$0x3] }
 0x109   : > { %3249 = vmatprep.mubr.msk.bf16.mxu0 %vm978_vm4, %v3840_v15  ;;  %v1790_v11 = vpack.c.bf16 %v1782_v8, %v1781_v7  ;;  %v2273_v23 = vpack.c.bf16 %v2265_v22, %v2264_v21  ;;  %v2528_v25 = vsel %vm1076_vm3, %v2502_v24, 0 }
 0x10f   : > { %3232 = vmatmul.mubr.msk.bf16.gmra.mxu1 %vm978_vm4, %v3850_v28 }
 0x110   : > { %3250 = vmatmul.mubr.msk.bf16.gmra.mxu0 %vm978_vm4, %v3852_v29  ;;  %3235 = vmatprep.mubr.msk.bf16.mxu1 %vm978_vm4, %v3854_v30 }
 0x111   : > { %3253 = vmatprep.mubr.msk.bf16.mxu0 %vm978_vm4, %v3856_v31 }
 0x117   : > { %3236 = vmatmul.mubr.msk.bf16.gmra.mxu1 %vm978_vm4, %v3866_v38 }
 0x118   : > { %3254 = vmatmul.mubr.msk.bf16.gmra.mxu0 %vm978_vm4, %v3868_v39  ;;  %3259 = vmatprep.mubr.msk.bf16.mxu1 %vm978_vm4, %v1317_v40 }
 0x119   : > { %3277 = vmatprep.mubr.msk.bf16.mxu0 %vm978_vm4, %v3802_v61  ;;  %v3910_v61 = vpack.c.bf16 %v1314_v59, %v1313_v18 }
 0x11f   : > { %3260 = vmatmul.mubr.msk.bf16.vlgmr.msra.gmra.mxu1 %vm978_vm4, %v1318_v45 }
 0x120   : > { %3278 = vmatmul.mubr.msk.bf16.vlgmr.msra.gmra.mxu0 %vm978_vm4, %v3811_v19  ;;  %3294 = vmatpush3.bf16.msra.mxu1 %v1668_v46 }
 0x121   : > { %3263 = vmatprep.mubr.msk.bf16.mxu1 %vm978_vm4, %v3878_v47  ;;  %3281 = vmatprep.mubr.msk.bf16.mxu0 %vm978_vm4, %v3834_v12 }
 0x122   : > { %3312 = vmatpush3.bf16.msra.mxu0 %v1818_v48  ;;  %3409 = vmatprep.subr.msk.bf16.mxu1 %vm1076_vm3, %v3007_v49 }
 0x123   : > { %3410 = vmatprep.subr.msk.bf16.mxu0 %vm1076_vm3, %v3006_v50 }
 0x127   : > { %3264 = vmatmul.mubr.msk.bf16.gmra.mxu1 %vm978_vm4, %v3896_v55 }
 0x128   : > { %3282 = vmatmul.mubr.msk.bf16.gmra.mxu0 %vm978_vm4, %v3838_v14  ;;  %3267 = vmatprep.mubr.msk.bf16.mxu1 %vm978_vm4, %v3898_v56 }
 0x129   : > { %3285 = vmatprep.mubr.msk.bf16.mxu0 %vm978_vm4, %v3850_v28 }
 0x12f   : > { %3268 = vmatmul.mubr.msk.bf16.gmra.mxu1 %vm978_vm4, %v3908_v60 }
 0x130   : > { %3286 = vmatmul.mubr.msk.bf16.gmra.mxu0 %vm978_vm4, %v3854_v30  ;;  %3271 = vmatprep.mubr.msk.bf16.mxu1 %vm978_vm4, %v3910_v61 }
 0x131   : > { %3289 = vmatprep.mubr.msk.bf16.mxu0 %vm978_vm4, %v3866_v38 }
 0x137   : > { %3272 = vmatmul.mubr.msk.bf16.gmra.mxu1 %vm978_vm4, %v1324_v3 }
 0x138   : > { %3290 = vmatmul.mubr.msk.bf16.gmra.mxu0 %vm978_vm4, %v1516_v4  ;;  %3295 = vmatprep.mubr.msk.bf16.mxu1 %vm978_vm4, %v3804_v62  ;;  %v1482_v62 = vld [vmem:[#allocation2 + $0xc8] sm:$0xff] }
 0x139   : > { %3313 = vmatprep.mubr.msk.bf16.mxu0 %vm978_vm4, %v1318_v45  ;;  %v1490_v10 = vpack.c.bf16 %v1482_v62, %v1481_v9 }
 0x13f   : > { %3296 = vmatmul.mubr.msk.bf16.vlgmr.msra.gmra.mxu1 %vm978_vm4, %v3819_v2 }
 0x140   : > { %3314 = vmatmul.mubr.msk.bf16.vlgmr.msra.gmra.mxu0 %vm978_vm4, %v3878_v47  ;;  %3330 = vmatpush3.bf16.msra.mxu1 %v2027_v17 }
 0x141   : > { %3299 = vmatprep.mubr.msk.bf16.mxu1 %vm978_vm4, %v3836_v13  ;;  %3317 = vmatprep.mubr.msk.bf16.mxu0 %vm978_vm4, %v3896_v55 }
 0x142   : > { %3348 = vmatpush3.bf16.msra.mxu0 %v2151_v5  ;;  %3411 = vmatprep.subr.msk.bf16.mxu1 %vm1076_vm3, %v3024_v6 }
 0x143   : > { %3412 = vmatprep.subr.msk.bf16.mxu0 %vm1076_vm3, %v2502_v24 }
 0x147   : > { %3300 = vmatmul.mubr.msk.bf16.gmra.mxu1 %vm978_vm4, %v3840_v15 }
 0x148   : > { %3318 = vmatmul.mubr.msk.bf16.gmra.mxu0 %vm978_vm4, %v3898_v56  ;;  %3303 = vmatprep.mubr.msk.bf16.mxu1 %vm978_vm4, %v3852_v29 }
 0x149   : > { %3321 = vmatprep.mubr.msk.bf16.mxu0 %vm978_vm4, %v3908_v60 }
 0x14f   : > { %3304 = vmatmul.mubr.msk.bf16.gmra.mxu1 %vm978_vm4, %v3856_v31 }
 0x150   : > { %3322 = vmatmul.mubr.msk.bf16.gmra.mxu0 %vm978_vm4, %v3910_v61  ;;  %3307 = vmatprep.mubr.msk.bf16.mxu1 %vm978_vm4, %v3868_v39 }
 0x151   : > { %3325 = vmatprep.mubr.msk.bf16.mxu0 %vm978_vm4, %v1324_v3 }
 0x157   : > { %3308 = vmatmul.mubr.msk.bf16.gmra.mxu1 %vm978_vm4, %v1490_v10 }
 0x158   : > { %3326 = vmatmul.mubr.msk.bf16.gmra.mxu0 %vm978_vm4, %v1790_v11  ;;  %3331 = vmatprep.mubr.msk.bf16.mxu1 %vm978_vm4, %v3811_v19  ;;  %v1990_v19 = vld [vmem:[#allocation2 + $0xd9] sm:$0xff] }
 0x159   : > { %3349 = vmatprep.mubr.msk.bf16.mxu0 %vm978_vm4, %v3819_v2  ;;  %v1991_v2 = vld [vmem:[#allocation2 + $0xe1] sm:$0xff] }
 0x15f   : > { %3332 = vmatmul.mubr.msk.bf16.vlgmr.msra.gmra.mxu1 %vm978_vm4, %v3834_v12  ;;  %v1964_v12 = vld [vmem:[#allocation2 + $0xd8] sm:$0xff] }
 0x160   : > { %3350 = vmatmul.mubr.msk.bf16.vlgmr.msra.gmra.mxu0 %vm978_vm4, %v3836_v13  ;;  %3366 = vmatpush3.bf16.msra.mxu1 %v2301_v20  ;;  %v1965_v13 = vld [vmem:[#allocation2 + $0xe0] sm:$0xff] }
 0x161   : > { %3335 = vmatprep.mubr.msk.bf16.mxu1 %vm978_vm4, %v3838_v14  ;;  %3353 = vmatprep.mubr.msk.bf16.mxu0 %vm978_vm4, %v3840_v15  ;;  %v1999_v14 = vpack.c.bf16 %v1991_v2, %v1990_v19  ;;  %v1973_v15 = vpack.c.bf16 %v1965_v13, %v1964_v12 }
 0x162   : > { %3384 = vmatpush3.bf16.msra.mxu0 %v2528_v25 }
 0x167   : > { %3336 = vmatmul.mubr.msk.bf16.gmra.mxu1 %vm978_vm4, %v3850_v28 }
 0x168   : > { %3354 = vmatmul.mubr.msk.bf16.gmra.mxu0 %vm978_vm4, %v3852_v29  ;;  %3339 = vmatprep.mubr.msk.bf16.mxu1 %vm978_vm4, %v3854_v30 }
 0x169   : > { %3357 = vmatprep.mubr.msk.bf16.mxu0 %vm978_vm4, %v3856_v31 }
 0x16f   : > { %3340 = vmatmul.mubr.msk.bf16.gmra.mxu1 %vm978_vm4, %v3866_v38 }
 0x170   : > { %3358 = vmatmul.mubr.msk.bf16.gmra.mxu0 %vm978_vm4, %v3868_v39  ;;  %3343 = vmatprep.mubr.msk.bf16.mxu1 %vm978_vm4, %v1516_v4 }
 0x171   : > { %3361 = vmatprep.mubr.msk.bf16.mxu0 %vm978_vm4, %v1490_v10 }
 0x177   : > { %3344 = vmatmul.mubr.msk.bf16.gmra.mxu1 %vm978_vm4, %v1999_v14 }
 0x178   : > { %3362 = vmatmul.mubr.msk.bf16.gmra.mxu0 %vm978_vm4, %v1973_v15  ;;  %3367 = vmatprep.mubr.msk.bf16.mxu1 %vm978_vm4, %v3878_v47 }
 0x17f   : > { %3368 = vmatmul.mubr.msk.bf16.vlgmr.msra.gmra.mxu1 %vm978_vm4, %v3896_v55 }
 0x180   : > { %3371 = vmatprep.mubr.msk.bf16.mxu1 %vm978_vm4, %v3898_v56 }
 0x187   : > { %3372 = vmatmul.mubr.msk.bf16.gmra.mxu1 %vm978_vm4, %v3908_v60 }
 0x188   : > { %3375 = vmatprep.mubr.msk.bf16.mxu1 %vm978_vm4, %v3910_v61 }
 0x18f   : > { %3376 = vmatmul.mubr.msk.bf16.gmra.mxu1 %vm978_vm4, %v1324_v3 }
 0x190   : > { %3379 = vmatprep.mubr.msk.bf16.mxu1 %vm978_vm4, %v1790_v11 }
 0x197   : > { %3380 = vmatmul.mubr.msk.bf16.gmra.mxu1 %vm978_vm4, %v2273_v23 }
 0x1bf   : > { %v3225_v26 = vpop.f32.mrf.mxu1 }
 0x1c0   : > { %v3243_v27 = vpop.f32.mrf.mxu0 }
 0x1c1   : > { %v1247_v28 = vadd.f32 %v3243_v27, %v3225_v26  ;;  %v1114_v29 = vpop.f32.mrf.mxu1 }
 0x1c2   : > { %v1238_v30 = vpop.f32.mrf.mxu0 }
 0x1c3   : > { %v1239_v31 = vadd.f32 %v1238_v30, %v1114_v29  ;;  %v3226_v32 = vpop.f32.mrf.mxu1 }
 0x1c4   : > { %v3244_v33 = vpop.f32.mrf.mxu0 }
 0x1c5   : > { %v1250_v34 = vadd.f32 %v3244_v33, %v3226_v32  ;;  %v1117_v35 = vpop.f32.mrf.mxu1 }
 0x1c6   : > { %v1241_v36 = vpop.f32.mrf.mxu0 }
 0x1c7   : > { %v1242_v37 = vadd.f32 %v1241_v36, %v1117_v35  ;;  %v3229_v38 = vpop.f32.mrf.mxu1 }
 0x1c8   : > { %v3247_v39 = vpop.f32.mrf.mxu0 }
 0x1c9   : > { %v1263_v40 = vadd.f32 %v3247_v39, %v3229_v38  ;;  %v1130_v41 = vpop.f32.mrf.mxu1 }
 0x1ca   : > { %v1254_v42 = vpop.f32.mrf.mxu0 }
 0x1cb   : > { %v1255_v43 = vadd.f32 %v1254_v42, %v1130_v41  ;;  %v3230_v44 = vpop.f32.mrf.mxu1 }
 0x1cc   : > { %v3248_v45 = vpop.f32.mrf.mxu0 }
 0x1cd   : > { %v1266_v46 = vadd.f32 %v3248_v45, %v3230_v44  ;;  %v1133_v47 = vpop.f32.mrf.mxu1 }
 0x1ce   : > { %v1257_v48 = vpop.f32.mrf.mxu0 }
 0x1cf   : > { %v1258_v49 = vadd.f32 %v1257_v48, %v1133_v47  ;;  %v3233_v50 = vpop.f32.mrf.mxu1 }
 0x1d0   : > { %v3251_v51 = vpop.f32.mrf.mxu0 }
 0x1d1   : > { %v1279_v52 = vadd.f32 %v3251_v51, %v3233_v50  ;;  %v1146_v53 = vpop.f32.mrf.mxu1 }
 0x1d2   : > { %v1270_v54 = vpop.f32.mrf.mxu0 }
 0x1d3   : > { %v1271_v55 = vadd.f32 %v1270_v54, %v1146_v53  ;;  %v3234_v56 = vpop.f32.mrf.mxu1 }
 0x1d4   : > { %v3252_v57 = vpop.f32.mrf.mxu0 }
 0x1d5   : > { %v1282_v58 = vadd.f32 %v3252_v57, %v3234_v56  ;;  %v1149_v18 = vpop.f32.mrf.mxu1 }
 0x1d6   : > { %v1273_v59 = vpop.f32.mrf.mxu0 }
 0x1d7   : > { %v1274_v60 = vadd.f32 %v1273_v59, %v1149_v18  ;;  %v3237_v61 = vpop.f32.mrf.mxu1 }
 0x1d8   : > { %v3255_v63 = vpop.f32.mrf.mxu0 }
 0x1d9   : > { %v1295_v0 = vadd.f32 %v3255_v63, %v3237_v61  ;;  %v1162_v1 = vpop.f32.mrf.mxu1 }
 0x1da   : > { %v1286_v16 = vpop.f32.mrf.mxu0 }
 0x1db   : > { %v1287_v3 = vadd.f32 %v1286_v16, %v1162_v1  ;;  %v3238_v4 = vpop.f32.mrf.mxu1 }
 0x1dc   : > { %v3256_v17 = vpop.f32.mrf.mxu0 }
 0x1dd   : > { %v1298_v5 = vadd.f32 %v3256_v17, %v3238_v4  ;;  %v1165_v6 = vpop.f32.mrf.mxu1 }
 0x1de   : > { %v1289_v62 = vpop.f32.mrf.mxu0 }
 0x1df   : > { %v1290_v7 = vadd.f32 %v1289_v62, %v1165_v6  ;;  %v3261_v8 = vpop.f32.mrf.mxu1 }
 0x1e0   : > { %v3279_v9 = vpop.f32.mrf.mxu0  ;;  %v1453_v10 = vadd.f32 %v3261_v8, %v1247_v28 }
 0x1e1   : > { %v1388_v11 = vpop.f32.mrf.mxu1 }
 0x1e2   : > { %v1580_v20 = vpop.f32.mrf.mxu0  ;;  %v1451_v19 = vadd.f32 %v1388_v11, %v1239_v31 }
 0x1e3   : > { %v3262_v2 = vpop.f32.mrf.mxu1 }
 0x1e4   : > { %v3280_v12 = vpop.f32.mrf.mxu0  ;;  %v1454_v13 = vadd.f32 %v3262_v2, %v1250_v34 }
 0x1e5   : > { %v1391_v14 = vpop.f32.mrf.mxu1 }
 0x1e6   : > { %v4003_v15 = vpop.f32.mrf.mxu0  ;;  %v4005_v21 = vadd.f32 %v1391_v14, %v1242_v37 }
 0x1e7   : > { %v3265_v22 = vpop.f32.mrf.mxu1 }
 0x1e8   : > { %v3283_v23 = vpop.f32.mrf.mxu0  ;;  %v1457_v24 = vadd.f32 %v3265_v22, %v1263_v40 }
 0x1e9   : > { %v1404_v25 = vpop.f32.mrf.mxu1 }
 0x1ea   : > { %v1596_v26 = vpop.f32.mrf.mxu0  ;;  %v1455_v27 = vadd.f32 %v1404_v25, %v1255_v43 }
 0x1eb   : > { %v3266_v29 = vpop.f32.mrf.mxu1 }
 0x1ec   : > { %v3284_v30 = vpop.f32.mrf.mxu0  ;;  %v4007_v28 = vadd.f32 %v3266_v29, %v1266_v46 }
 0x1ed   : > { %v1407_v32 = vpop.f32.mrf.mxu1 }
 0x1ee   : > { %v4009_v31 = vpop.f32.mrf.mxu0  ;;  %v4011_v33 = vadd.f32 %v1407_v32, %v1258_v49 }
 0x1ef   : > { %v3269_v34 = vpop.f32.mrf.mxu1 }
 0x1f0   : > { %v3287_v35 = vpop.f32.mrf.mxu0  ;;  %v4013_v36 = vadd.f32 %v3269_v34, %v1279_v52 }
 0x1f1   : > { %v1420_v37 = vpop.f32.mrf.mxu1 }
 0x1f2   : > { %v1612_v38 = vpop.f32.mrf.mxu0  ;;  %v4015_v39 = vadd.f32 %v1420_v37, %v1271_v55 }
 0x1f3   : > { %v3270_v40 = vpop.f32.mrf.mxu1 }
 0x1f4   : > { %v3288_v41 = vpop.f32.mrf.mxu0  ;;  %v4017_v42 = vadd.f32 %v3270_v40, %v1282_v58 }
 0x1f5   : > { %v1423_v43 = vpop.f32.mrf.mxu1 }
 0x1f6   : > { %v4019_v44 = vpop.f32.mrf.mxu0  ;;  %v4021_v45 = vadd.f32 %v1423_v43, %v1274_v60 }
 0x1f7   : > { %v3273_v46 = vpop.f32.mrf.mxu1 }
 0x1f8   : > { %v4023_v47 = vpop.f32.mrf.mxu0  ;;  %v4025_v48 = vadd.f32 %v3273_v46, %v1295_v0 }
 0x1f9   : > { %v1436_v49 = vpop.f32.mrf.mxu1 }
 0x1fa   : > { %v4027_v50 = vpop.f32.mrf.mxu0  ;;  %v4029_v51 = vadd.f32 %v1436_v49, %v1287_v3 }
 0x1fb   : > { %v3274_v52 = vpop.f32.mrf.mxu1 }
 0x1fc   : > { %v4031_v53 = vpop.f32.mrf.mxu0  ;;  %v4033_v54 = vadd.f32 %v3274_v52, %v1298_v5 }
 0x1fd   : > { %v1439_v55 = vpop.f32.mrf.mxu1 }
 0x1fe   : > { %v4035_v56 = vpop.f32.mrf.mxu0  ;;  %v4037_v57 = vadd.f32 %v1439_v55, %v1290_v7 }
 0x1ff   : > { %v3297_v58 = vpop.f32.mrf.mxu1 }
 0x200   : > { %4311 = vst [vmem:[#allocation5_spill] sm:$0xff] %v4037_v57  ;;  %v3315_v18 = vpop.f32.mrf.mxu0  ;;  %v1713_v59 = vadd.f32 %v3297_v58, %v3279_v9 }
 0x201   : > { %v1704_v60 = vpop.f32.mrf.mxu1 }
 0x202   : > { %v1854_v61 = vpop.f32.mrf.mxu0  ;;  %v1919_v63 = vadd.f32 %v3315_v18, %v1713_v59  ;;  %v1705_v0 = vadd.f32 %v1704_v60, %v1580_v20 }
 0x203   : > { %v3298_v1 = vpop.f32.mrf.mxu1 }
 0x204   : > { %v3316_v16 = vpop.f32.mrf.mxu0  ;;  %v4039_v3 = vadd.f32 %v1919_v63, %v1453_v10  ;;  %v1917_v4 = vadd.f32 %v1854_v61, %v1705_v0  ;;  %v1716_v17 = vadd.f32 %v3298_v1, %v3280_v12 }
 0x205   : > { %v4041_v5 = vpop.f32.mrf.mxu1 }
 0x206   : > { %v4043_v6 = vpop.f32.mrf.mxu0  ;;  %v4045_v62 = vadd.f32 %v1917_v4, %v1451_v19  ;;  %v1920_v7 = vadd.f32 %v3316_v16, %v1716_v17 }
 0x207   : > { %v3301_v8 = vpop.f32.mrf.mxu1 }
 0x208   : > { %v3319_v11 = vpop.f32.mrf.mxu0  ;;  %v4047_v9 = vadd.f32 %v1920_v7, %v1454_v13  ;;  %v1729_v2 = vadd.f32 %v3301_v8, %v3283_v23 }
 0x209   : > { %v1720_v14 = vpop.f32.mrf.mxu1 }
 0x20a   : > { %v1870_v20 = vpop.f32.mrf.mxu0  ;;  %v1923_v22 = vadd.f32 %v3319_v11, %v1729_v2  ;;  %v1721_v25 = vadd.f32 %v1720_v14, %v1596_v26 }
 0x20b   : > { %v3302_v10 = vpop.f32.mrf.mxu1 }
 0x20c   : > { %v3320_v29 = vpop.f32.mrf.mxu0  ;;  %v4049_v32 = vadd.f32 %v1923_v22, %v1457_v24  ;;  %v1921_v12 = vadd.f32 %v1870_v20, %v1721_v25  ;;  %v1732_v34 = vadd.f32 %v3302_v10, %v3284_v30 }
 0x20d   : > { %v4051_v37 = vpop.f32.mrf.mxu1 }
 0x20e   : > { %v4053_v19 = vpop.f32.mrf.mxu0  ;;  %v4055_v40 = vadd.f32 %v1921_v12, %v1455_v27  ;;  %v1924_v43 = vadd.f32 %v3320_v29, %v1732_v34 }
 0x20f   : > { %v3305_v13 = vpop.f32.mrf.mxu1 }
 0x210   : > { %v3323_v46 = vpop.f32.mrf.mxu0  ;;  %v4058_v23 = vadd.f32 %v1924_v43, %v4007_v28  ;;  %v1745_v49 = vadd.f32 %v3305_v13, %v3287_v35 }
 0x211   : > { %v1736_v26 = vpop.f32.mrf.mxu1 }
 0x212   : > { %v1886_v52 = vpop.f32.mrf.mxu0  ;;  %v1927_v55 = vadd.f32 %v3323_v46, %v1745_v49  ;;  %v1737_v24 = vadd.f32 %v1736_v26, %v1612_v38 }
 0x213   : > { %v3306_v58 = vpop.f32.mrf.mxu1 }
 0x214   : > { %v3324_v18 = vpop.f32.mrf.mxu0  ;;  %v4061_v30 = vadd.f32 %v1927_v55, %v4013_v36  ;;  %v1925_v59 = vadd.f32 %v1886_v52, %v1737_v24  ;;  %v1748_v60 = vadd.f32 %v3306_v58, %v3288_v41 }
 0x215   : > { %v4063_v27 = vpop.f32.mrf.mxu1 }
 0x216   : > { %v4065_v61 = vpop.f32.mrf.mxu0  ;;  %v4068_v63 = vadd.f32 %v1925_v59, %v4015_v39  ;;  %v1928_v28 = vadd.f32 %v3324_v18, %v1748_v60 }
 0x217   : > { %v3309_v35 = vpop.f32.mrf.mxu1 }
 0x218   : > { %v3327_v0 = vpop.f32.mrf.mxu0  ;;  %v4071_v1 = vadd.f32 %v1928_v28, %v4017_v42  ;;  %v1761_v38 = vadd.f32 %v3309_v35, %v4023_v47 }
 0x219   : > { %v1752_v16 = vpop.f32.mrf.mxu1 }
 0x21a   : > { %v1902_v36 = vpop.f32.mrf.mxu0  ;;  %v1931_v4 = vadd.f32 %v3327_v0, %v1761_v38  ;;  %v1753_v41 = vadd.f32 %v1752_v16, %v4027_v50  ;;  %v1708_v0 = vadd.f32 %v4041_v5, %v4003_v15 }
 0x21b   : > { %v3310_v17 = vpop.f32.mrf.mxu1 }
 0x21c   : > { %v3328_v7 = vpop.f32.mrf.mxu0  ;;  %v4076_v8 = vadd.f32 %v1931_v4, %v4025_v48  ;;  %v1929_v39 = vadd.f32 %v1902_v36, %v1753_v41  ;;  %v1764_v11 = vadd.f32 %v3310_v17, %v4031_v53  ;;  %v4108_v17 = vld [vmem:[%s4299_s8] ss:$0 sm:$0xff] }
 0x21d   : > { %v4079_v2 = vpop.f32.mrf.mxu1 }
 0x21e   : > { %v4081_v14 = vpop.f32.mrf.mxu0  ;;  %v4084_v42 = vadd.f32 %v1929_v39, %v4029_v51  ;;  %v1932_v47 = vadd.f32 %v3328_v7, %v1764_v11  ;;  %v1918_v39 = vadd.f32 %v4043_v6, %v1708_v0 }
 0x21f   : > { %v3333_v20 = vpop.f32.mrf.mxu1 }
 0x220   : > { %4312 = vst [vmem:[#allocation6_spill] sm:$0xff] %v4084_v42  ;;  %v3351_v22 = vpop.f32.mrf.mxu0  ;;  %v4087_v50 = vadd.f32 %v1932_v47, %v4033_v54  ;;  %v1934_v6 = vadd.f32 %v1918_v39, %v4005_v21 }
 0x221   : > { %v2063_v25 = vpop.f32.mrf.mxu1  ;;  %v2196_v38 = vadd.f32 %v3351_v22, %v3333_v20  ;;  %v4116_v20 = vld [vmem:[%s4300_s9] ss:$0 sm:$0xff] }
 0x222   : > { %4313 = vst [vmem:[#allocation7_spill] sm:$0xff] %v4087_v50  ;;  %v2187_v10 = vpop.f32.mrf.mxu0 }
 0x223   : > { %v3334_v48 = vpop.f32.mrf.mxu1  ;;  %v2188_v36 = vadd.f32 %v2187_v10, %v2063_v25 }
 0x224   : > { %v3352_v29 = vpop.f32.mrf.mxu0 }
 0x225   : > { %v2066_v12 = vpop.f32.mrf.mxu1  ;;  %v2199_v11 = vadd.f32 %v3352_v29, %v3334_v48 }
 0x226   : > { %v2190_v53 = vpop.f32.mrf.mxu0 }
 0x227   : > { %v3337_v34 = vpop.f32.mrf.mxu1  ;;  %v2191_v42 = vadd.f32 %v2190_v53, %v2066_v12  ;;  %v1724_v12 = vadd.f32 %v4051_v37, %v4009_v31 }
 0x228   : > { %v3355_v46 = vpop.f32.mrf.mxu0 }
 0x229   : > { %v2079_v43 = vpop.f32.mrf.mxu1  ;;  %v2212_v53 = vadd.f32 %v3355_v46, %v3337_v34  ;;  %v1922_v31 = vadd.f32 %v4053_v19, %v1724_v12 }
 0x22a   : > { %v2203_v51 = vpop.f32.mrf.mxu0 }
 0x22b   : > { %v3338_v13 = vpop.f32.mrf.mxu1 }
 0x22c   : > { %v3356_v24 = vpop.f32.mrf.mxu0 }
 0x22d   : > { %v2082_v49 = vpop.f32.mrf.mxu1 }
 0x22e   : > { %v2206_v18 = vpop.f32.mrf.mxu0 }
 0x22f   : > { %v3341_v26 = vpop.f32.mrf.mxu1 }
 0x230   : > { %v3359_v28 = vpop.f32.mrf.mxu0 }
 0x231   : > { %v4089_v52 = vpop.f32.mrf.mxu1 }
 0x232   : > { %v2219_v4 = vpop.f32.mrf.mxu0 }
 0x233   : > { %v4091_v55 = vpop.f32.mrf.mxu1 }
 0x234   : > { %v3360_v15 = vpop.f32.mrf.mxu0 }
 0x235   : > { %v4093_v54 = vpop.f32.mrf.mxu1 }
 0x237   : > { %v4095_v58 = vpop.f32.mrf.mxu1 }
 0x239   : > { %v4097_v59 = vpop.f32.mrf.mxu1 }
 0x23b   : > { %v4099_v60 = vpop.f32.mrf.mxu1 }
 0x23d   : > { %v4101_v35 = vpop.f32.mrf.mxu1 }
 0x23f   : > { %v3369_v16 = vpop.f32.mrf.mxu1 }
 0x240   : > { %v2402_v41 = vadd.f32 %v3369_v16, %v2196_v38  ;;  %v2204_v16 = vadd.f32 %v2203_v51, %v2079_v43 }
 0x241   : > { %v2337_v7 = vpop.f32.mrf.mxu1 }
 0x242   : > { %v2418_v47 = vadd.f32 %v2402_v41, %v4039_v3  ;;  %v2400_v50 = vadd.f32 %v2337_v7, %v2188_v36  ;;  %v2222_v36 = vpop.f32.mrf.mxu0 }
 0x243   : > { %v3370_v57 = vpop.f32.mrf.mxu1 }
 0x244   : > { %v2441_v5 = vmul.f32 %v4108_v17, %v2418_v47  ;;  %v2416_v22 = vadd.f32 %v2400_v50, %v4045_v62  ;;  %v2403_v25 = vadd.f32 %v3370_v57, %v2199_v11  ;;  %v2215_v50 = vadd.f32 %v3356_v24, %v3338_v13  ;;  %v3363_v46 = vpop.f32.mrf.mxu0 }
 0x245   : > { %v2340_v10 = vpop.f32.mrf.mxu1  ;;  %v1740_v47 = vadd.f32 %v4063_v27, %v4019_v44 }
 0x246   : > { %v2439_v48 = vmul.f32 %v4108_v17, %v2416_v22  ;;  %v2419_v3 = vadd.f32 %v2403_v25, %v4047_v9  ;;  %v2401_v29 = vadd.f32 %v2340_v10, %v2191_v42  ;;  %v2464_v0 = vadd.f32 %v4116_v20, %v2441_v5 }
 0x247   : > { %v3373_v38 = vpop.f32.mrf.mxu1  ;;  %v2207_v5 = vadd.f32 %v2206_v18, %v2082_v49  ;;  %v2228_v22 = vadd.f32 %v3359_v28, %v3341_v26  ;;  %v1926_v26 = vadd.f32 %v4065_v61, %v1740_v47 }
 0x248   : > { %v2442_v62 = vmul.f32 %v4108_v17, %v2419_v3  ;;  %v2417_v57 = vadd.f32 %v2401_v29, %v1934_v6  ;;  %v2406_v41 = vadd.f32 %v3373_v38, %v2212_v53  ;;  %v2462_v7 = vadd.f32 %v4116_v20, %v2439_v48 }
 0x249   : > { %v2353_v21 = vpop.f32.mrf.mxu1  ;;  %v2480_v37 = vmax.f32 %v2464_v0, 0.0  ;;  %v1938_v3 = vadd.f32 %v1922_v31, %v4011_v33  ;;  %v2220_v53 = vadd.f32 %v2219_v4, %v4089_v52  ;;  %v2235_v0 = vpop.f32.mrf.mxu0  ;;  %v1756_v52 = vadd.f32 %v4079_v2, %v4035_v56 }
 0x24a   : > { %v2465_v9 = vadd.f32 %v4116_v20, %v2442_v62  ;;  %v2440_v42 = vmul.f32 %v4108_v17, %v2417_v57  ;;  %v2404_v39 = vadd.f32 %v2353_v21, %v2204_v16  ;;  %v2422_v34 = vadd.f32 %v2406_v41, %v4049_v32 }
 0x24b   : > { %v3374_v43 = vpop.f32.mrf.mxu1  ;;  %v2478_v19 = vmax.f32 %v2462_v7, 0.0  ;;  %v1942_v2 = vadd.f32 %v1926_v26, %v4021_v45 }
 0x24c   : > { %v2481_v51 = vmax.f32 %v2465_v9, 0.0  ;;  %v2463_v11 = vadd.f32 %v4116_v20, %v2440_v42  ;;  %v2420_v13 = vadd.f32 %v2404_v39, %v4055_v40  ;;  %v2407_v24 = vadd.f32 %v3374_v43, %v2215_v50 }
 0x24d   : > { %v2445_v25 = vmul.f32 %v4108_v17, %v2422_v34  ;;  %v2356_v10 = vpop.f32.mrf.mxu1  ;;  %v2223_v50 = vadd.f32 %v2222_v36, %v4093_v54  ;;  %v2244_v54 = vadd.f32 %v3363_v46, %v4095_v58  ;;  %v1930_v43 = vadd.f32 %v4081_v14, %v1756_v52 }
 0x24e   : > { %v2495_v6 = vpack.c.bf16 %v2481_v51, %v2480_v37  ;;  %v2479_v48 = vmax.f32 %v2463_v11, 0.0  ;;  %v2423_v32 = vadd.f32 %v2407_v24, %v4058_v23  ;;  %v2443_v29 = vmul.f32 %v4108_v17, %v2420_v13 }
 0x24f   : > { %v2405_v12 = vadd.f32 %v2356_v10, %v2207_v5  ;;  %v3377_v40 = vpop.f32.mrf.mxu1  ;;  %v2468_v18 = vadd.f32 %v4116_v20, %v2445_v25  ;;  %v2231_v23 = vadd.f32 %v3360_v15, %v4091_v55  ;;  %v3364_v55 = vpop.f32.mrf.mxu0  ;;  %v2236_v51 = vadd.f32 %v2235_v0, %v4097_v59 }
 0x250   : > { %v2446_v44 = vmul.f32 %v4108_v17, %v2423_v32  ;;  %v2410_v27 = vadd.f32 %v3377_v40, %v2228_v22  ;;  %v2494_v49 = vpack.c.bf16 %v2479_v48, %v2478_v19  ;;  %v2466_v4 = vadd.f32 %v4116_v20, %v2443_v29  ;;  %v4314_v32 = vld [vmem:[#allocation6_spill] sm:$0xff] }
 0x251   : > { %v2421_v28 = vadd.f32 %v2405_v12, %v1938_v3  ;;  %v2369_v38 = vpop.f32.mrf.mxu1  ;;  %v2484_v21 = vmax.f32 %v2468_v18, 0.0  ;;  %v2238_v11 = vpop.f32.mrf.mxu0  ;;  %v2247_v58 = vadd.f32 %v3364_v55, %v4099_v60  ;;  %v4315_v60 = vld [vmem:[#allocation5_spill] sm:$0xff] }
 0x252   : > { %v2469_v33 = vadd.f32 %v4116_v20, %v2446_v44  ;;  %v2426_v16 = vadd.f32 %v2410_v27, %v4061_v30  ;;  %v2408_v62 = vadd.f32 %v2369_v38, %v2220_v53  ;;  %3385 = vmatprep.mubr.msk.bf16.mxu0 %vm978_vm4, %v2494_v49  ;;  %v2482_v36 = vmax.f32 %v2466_v4, 0.0  ;;  %v4316_v27 = vld [vmem:[#allocation7_spill] sm:$0xff] }
 0x253   : > { %v2444_v61 = vmul.f32 %v4108_v17, %v2421_v28  ;;  %v3378_v57 = vpop.f32.mrf.mxu1  ;;  %3386 = vmatmul.mubr.msk.bf16.vlgmr.msra.gmra.mxu0 %vm978_vm4, %v2495_v6  ;;  %v2239_v59 = vadd.f32 %v2238_v11, %v4101_v35  ;;  %v1946_v12 = vadd.f32 %v1930_v43, %v4315_v60 }
 0x254   : > { %v2485_v15 = vmax.f32 %v2469_v33, 0.0  ;;  %v2424_v41 = vadd.f32 %v2408_v62, %v4068_v63  ;;  %v2411_v30 = vadd.f32 %v3378_v57, %v2231_v23  ;;  %v2449_v9 = vmul.f32 %v4108_v17, %v2426_v16 }
 0x255   : > { %v2467_v7 = vadd.f32 %v4116_v20, %v2444_v61  ;;  %v2372_v56 = vpop.f32.mrf.mxu1 }
 0x256   : > { %v2447_v42 = vmul.f32 %v4108_v17, %v2424_v41  ;;  %v2427_v39 = vadd.f32 %v2411_v30, %v4071_v1  ;;  %v2409_v31 = vadd.f32 %v2372_v56, %v2223_v50  ;;  %v2497_v63 = vpack.c.bf16 %v2485_v15, %v2484_v21  ;;  %v3081_v30 = vld [vmem:[%s3623_s29 + $0x8] sm:$0xff]  }
 0x257   : > { %v2483_v37 = vmax.f32 %v2467_v7, 0.0  ;;  %v3381_v34 = vpop.f32.mrf.mxu1  ;;  %v2472_v45 = vadd.f32 %v4116_v20, %v2449_v9  ;;  %v3050_v7 = vld [vmem:[%s3623_s29] sm:$0xff]   ;;  %v3055_v56 = vunpack.c.l.bf16 %v3081_v30 }
 0x258   : > { %v2450_v13 = vmul.f32 %v4108_v17, %v2427_v39  ;;  %v2425_v24 = vadd.f32 %v2409_v31, %v1942_v2  ;;  %v2470_v47 = vadd.f32 %v4116_v20, %v2447_v42  ;;  %v2414_v1 = vadd.f32 %v3381_v34, %v2244_v54 }
 0x259   : > { %v2385_v5 = vpop.f32.mrf.mxu1  ;;  %v2496_v22 = vpack.c.bf16 %v2483_v37, %v2482_v36  ;;  %v2488_v40 = vmax.f32 %v2472_v45, 0.0  ;;  %v3051_v31 = vunpack.c.l.bf16 %v3050_v7 }
 0x25a   : > { %v2473_v46 = vadd.f32 %v4116_v20, %v2450_v13  ;;  %v2448_v25 = vmul.f32 %v4108_v17, %v2425_v24  ;;  %v2412_v14 = vadd.f32 %v2385_v5, %v2236_v51  ;;  %v2430_v10 = vadd.f32 %v2414_v1, %v4076_v8 }
 0x25b   : > { %3389 = vmatprep.mubr.msk.bf16.mxu0 %vm978_vm4, %v2496_v22  ;;  %v3382_v19 = vpop.f32.mrf.mxu1  ;;  %v2486_v53 = vmax.f32 %v2470_v47, 0.0  ;;  %v3052_v51 = vunpack.c.h.bf16 %v3050_v7  ;;  %v3083_v47 = vld [vmem:[%s3623_s29 + $0x18] sm:$0xff]  }
 0x25c   : > { %v2489_v6 = vmax.f32 %v2473_v46, 0.0  ;;  %v2471_v48 = vadd.f32 %v4116_v20, %v2448_v25  ;;  %v2428_v3 = vadd.f32 %v2412_v14, %v4314_v32  ;;  %v2415_v29 = vadd.f32 %v3382_v19, %v2247_v58  ;;  %3390 = vmatmul.mubr.msk.bf16.gmra.mxu0 %vm978_vm4, %v2497_v63  ;;  %v3082_v46 = vld [vmem:[%s3623_s29 + $0x10] sm:$0xff]  }
 0x25d   : > { %v2453_v0 = vmul.f32 %v4108_v17, %v2430_v10  ;;  %v2388_v35 = vpop.f32.mrf.mxu1  ;;  %v3056_v63 = vunpack.c.h.bf16 %v3081_v30  ;;  %v3063_v14 = vunpack.c.l.bf16 %v3083_v47  ;;  %v3059_v32 = vunpack.c.l.bf16 %v3082_v46 }
 0x25e   : > { %v2487_v44 = vmax.f32 %v2471_v48, 0.0  ;;  %v2451_v8 = vmul.f32 %v4108_v17, %v2428_v3  ;;  %v2431_v49 = vadd.f32 %v2415_v29, %v4316_v27  ;;  %v2413_v26 = vadd.f32 %v2388_v35, %v2239_v59 }
 0x25f   : > { %v2499_v18 = vpack.c.bf16 %v2489_v6, %v2488_v40  ;;  %v2476_v28 = vadd.f32 %v4116_v20, %v2453_v0  ;;  %v3085_v0 = vld [vmem:[%s3623_s29 + $0x28] sm:$0xff]  }
 0x260   : > { %v2454_v38 = vmul.f32 %v4108_v17, %v2431_v49  ;;  %v2429_v23 = vadd.f32 %v2413_v26, %v1946_v12  ;;  %v2498_v33 = vpack.c.bf16 %v2487_v44, %v2486_v53  ;;  %v2474_v16 = vadd.f32 %v4116_v20, %v2451_v8 }
 0x261   : > { %v2492_v4 = vmax.f32 %v2476_v28, 0.0  ;;  %v3064_v53 = vunpack.c.h.bf16 %v3083_v47  ;;  %v3060_v44 = vunpack.c.h.bf16 %v3082_v46 }
 0x262   : > { %v2477_v62 = vadd.f32 %v4116_v20, %v2454_v38  ;;  %v2452_v52 = vmul.f32 %v4108_v17, %v2429_v23  ;;  %3393 = vmatprep.mubr.msk.bf16.mxu0 %vm978_vm4, %v2498_v33  ;;  %v2490_v50 = vmax.f32 %v2474_v16, 0.0  ;;  %v4191_v17 = vld [vmem:[%s4301_s10] ss:$0 sm:$0xff]  ;;  %v3071_v38 = vunpack.c.l.bf16 %v3085_v0 }
 0x264   : > { %v2493_v61 = vmax.f32 %v2477_v62, 0.0  ;;  %v2475_v57 = vadd.f32 %v4116_v20, %v2452_v52  ;;  %3394 = vmatmul.mubr.msk.bf16.gmra.mxu0 %vm978_vm4, %v2499_v18  ;;  %v4197_v20 = vld [vmem:[%s4302_s11] ss:$0 sm:$0xff] }
 0x265   : > { %v3084_v18 = vld [vmem:[%s3623_s29 + $0x20] sm:$0xff]  }
 0x266   : > { %v2491_v55 = vmax.f32 %v2475_v57, 0.0  ;;  %v2501_v15 = vpack.c.bf16 %v2493_v61, %v2492_v4  ;;  %v3067_v4 = vunpack.c.l.bf16 %v3084_v18 }
 0x268   : > { %v2500_v41 = vpack.c.bf16 %v2491_v55, %v2490_v50 }
 0x26a   : > { %3397 = vmatprep.mubr.msk.bf16.mxu0 %vm978_vm4, %v2500_v41  ;;  %v3072_v41 = vunpack.c.h.bf16 %v3085_v0 }
 0x26c   : > { %3398 = vmatmul.mubr.msk.bf16.gmra.mxu0 %vm978_vm4, %v2501_v15 }
 0x313   : > { %v3387_v21 = vpop.f32.mrf.mxu0 }
 0x314   : > { %v2636_v9 = vmul.f32 %v3387_v21, %v4191_v17 }
 0x315   : > { %v2564_v2 = vpop.f32.mrf.mxu0 }
 0x316   : > { %v2659_v42 = vadd.f32 %v4197_v20, %v2636_v9  ;;  %v2634_v39 = vmul.f32 %v4191_v17, %v2564_v2 }
 0x317   : > { %v3388_v54 = vpop.f32.mrf.mxu0 }
 0x318   : > { %v2707_v36 = vadd.f32 %v3055_v56, %v2659_v42  ;;  %v2657_v37 = vadd.f32 %v4197_v20, %v2634_v39  ;;  %v2637_v34 = vmul.f32 %v3388_v54, %v4191_v17  ;;  %v3087_v56 = vld [vmem:[%s3623_s29 + $0x38] sm:$0xff]   ;;  %v3068_v42 = vunpack.c.h.bf16 %v3084_v18 }
 0x319   : > { %v2567_v43 = vpop.f32.mrf.mxu0  ;;  %v3080_v46 = vunpack.c.h.bf16 %v3087_v56 }
 0x31a   : > { %v2723_v11 = vmax.f32 %v2707_v36, 0.0  ;;  %v2705_v13 = vadd.f32 %v3051_v31, %v2657_v37  ;;  %v2660_v24 = vadd.f32 %v4197_v20, %v2637_v34  ;;  %v2635_v45 = vmul.f32 %v4191_v17, %v2567_v43  ;;  %v3086_v37 = vld [vmem:[%s3623_s29 + $0x30] sm:$0xff]  }
 0x31c   : > { %2739 = vst.msk [vmem:[%s4209_s19 + $0x10] sm:$0xff] %vm649_vm0, %v2723_v11  ;;  %v2721_v1 = vmax.f32 %v2705_v13, 0.0  ;;  %v2708_v5 = vadd.f32 %v3056_v63, %v2660_v24  ;;  %v2658_v22 = vadd.f32 %v4197_v20, %v2635_v45  ;;  %v3391_v58 = vpop.f32.mrf.mxu0  ;;  %v3079_v63 = vunpack.c.l.bf16 %v3087_v56 }
 0x31d   : > { %v2640_v25 = vmul.f32 %v3391_v58, %v4191_v17  ;;  %v3075_v45 = vunpack.c.l.bf16 %v3086_v37 }
 0x31e   : > { %2737 = vst.msk [vmem:[%s4209_s19] sm:$0xff] %vm649_vm0, %v2721_v1  ;;  %v2724_v59 = vmax.f32 %v2708_v5, 0.0  ;;  %v2706_v10 = vadd.f32 %v3052_v51, %v2658_v22  ;;  %v2580_v19 = vpop.f32.mrf.mxu0 }
 0x31f   : > { %v2663_v6 = vadd.f32 %v4197_v20, %v2640_v25  ;;  %v2638_v48 = vmul.f32 %v4191_v17, %v2580_v19 }
 0x320   : > { %2740 = vst.msk [vmem:[%s4209_s19 + $0x18] sm:$0xff] %vm649_vm0, %v2724_v59  ;;  %v2722_v3 = vmax.f32 %v2706_v10, 0.0  ;;  %v3392_v29 = vpop.f32.mrf.mxu0 }
 0x321   : > { %v2711_v60 = vadd.f32 %v3063_v14, %v2663_v6  ;;  %v2661_v12 = vadd.f32 %v4197_v20, %v2638_v48  ;;  %v2641_v40 = vmul.f32 %v3392_v29, %v4191_v17  ;;  %v3076_v6 = vunpack.c.h.bf16 %v3086_v37 }
 0x322   : > { %2738 = vst.msk [vmem:[%s4209_s19 + $0x8] sm:$0xff] %vm649_vm0, %v2722_v3  ;;  %v2583_v35 = vpop.f32.mrf.mxu0 }
 0x323   : > { %v2727_v8 = vmax.f32 %v2711_v60, 0.0  ;;  %v2709_v27 = vadd.f32 %v3059_v32, %v2661_v12  ;;  %v2664_v49 = vadd.f32 %v4197_v20, %v2641_v40  ;;  %v2639_v26 = vmul.f32 %v4191_v17, %v2583_v35 }
 0x324   : > { %v3395_v28 = vpop.f32.mrf.mxu0 }
 0x325   : > { %2743 = vst.msk [vmem:[%s4209_s19 + $0x30] sm:$0xff] %vm649_vm0, %v2727_v8  ;;  %v2725_v23 = vmax.f32 %v2709_v27, 0.0  ;;  %v2712_v33 = vadd.f32 %v3064_v53, %v2664_v49  ;;  %v2662_v16 = vadd.f32 %v4197_v20, %v2639_v26  ;;  %v2644_v62 = vmul.f32 %v3395_v28, %v4191_v17 }
 0x326   : > { %v2596_v52 = vpop.f32.mrf.mxu0 }
 0x327   : > { %2741 = vst.msk [vmem:[%s4209_s19 + $0x20] sm:$0xff] %vm649_vm0, %v2725_v23  ;;  %v2728_v61 = vmax.f32 %v2712_v33, 0.0  ;;  %v2710_v57 = vadd.f32 %v3060_v44, %v2662_v16  ;;  %v2667_v50 = vadd.f32 %v4197_v20, %v2644_v62  ;;  %v2642_v55 = vmul.f32 %v4191_v17, %v2596_v52 }
 0x328   : > { %v3396_v15 = vpop.f32.mrf.mxu0 }
 0x329   : > { %2744 = vst.msk [vmem:[%s4209_s19 + $0x38] sm:$0xff] %vm649_vm0, %v2728_v61  ;;  %v2726_v30 = vmax.f32 %v2710_v57, 0.0  ;;  %v2715_v21 = vadd.f32 %v3071_v38, %v2667_v50  ;;  %v2665_v7 = vadd.f32 %v4197_v20, %v2642_v55  ;;  %v2645_v9 = vmul.f32 %v3396_v15, %v4191_v17 }
 0x32a   : > { %v2599_v2 = vpop.f32.mrf.mxu0 }
 0x32b   : > { %2742 = vst.msk [vmem:[%s4209_s19 + $0x28] sm:$0xff] %vm649_vm0, %v2726_v30  ;;  %v2731_v39 = vmax.f32 %v2715_v21, 0.0  ;;  %v2713_v31 = vadd.f32 %v3067_v4, %v2665_v7  ;;  %v2668_v54 = vadd.f32 %v4197_v20, %v2645_v9  ;;  %v2643_v36 = vmul.f32 %v4191_v17, %v2599_v2 }
 0x32c   : > { %v3399_v34 = vpop.f32.mrf.mxu0 }
 0x32d   : > { %2747 = vst.msk [vmem:[%s4209_s19 + $0x50] sm:$0xff] %vm649_vm0, %v2731_v39  ;;  %v2729_v43 = vmax.f32 %v2713_v31, 0.0  ;;  %v2716_v51 = vadd.f32 %v3072_v41, %v2668_v54  ;;  %v2666_v11 = vadd.f32 %v4197_v20, %v2643_v36  ;;  %v2648_v13 = vmul.f32 %v3399_v34, %v4191_v17 }
 0x32e   : > { %v2612_v24 = vpop.f32.mrf.mxu0 }
 0x32f   : > { %2745 = vst.msk [vmem:[%s4209_s19 + $0x40] sm:$0xff] %vm649_vm0, %v2729_v43  ;;  %v2732_v47 = vmax.f32 %v2716_v51, 0.0  ;;  %v2714_v1 = vadd.f32 %v3068_v42, %v2666_v11  ;;  %v2671_v5 = vadd.f32 %v4197_v20, %v2648_v13  ;;  %v2646_v22 = vmul.f32 %v4191_v17, %v2612_v24 }
 0x330   : > { %v3400_v58 = vpop.f32.mrf.mxu0 }
 0x331   : > { %2748 = vst.msk [vmem:[%s4209_s19 + $0x58] sm:$0xff] %vm649_vm0, %v2732_v47  ;;  %v2730_v25 = vmax.f32 %v2714_v1, 0.0  ;;  %v2719_v14 = vadd.f32 %v3079_v63, %v2671_v5  ;;  %v2669_v59 = vadd.f32 %v4197_v20, %v2646_v22  ;;  %v2649_v10 = vmul.f32 %v3400_v58, %v4191_v17 }
 0x332   : > { %v2615_v19 = vpop.f32.mrf.mxu0 }
 0x333   : > { %2746 = vst.msk [vmem:[%s4209_s19 + $0x48] sm:$0xff] %vm649_vm0, %v2730_v25  ;;  %v2735_v48 = vmax.f32 %v2719_v14, 0.0  ;;  %v2717_v32 = vadd.f32 %v3075_v45, %v2669_v59  ;;  %v2672_v3 = vadd.f32 %v4197_v20, %v2649_v10  ;;  %v2647_v29 = vmul.f32 %v4191_v17, %v2615_v19 }
 0x335   : > { %2751 = vst.msk [vmem:[%s4209_s19 + $0x70] sm:$0xff] %vm649_vm0, %v2735_v48  ;;  %v2733_v60 = vmax.f32 %v2717_v32, 0.0  ;;  %v2720_v12 = vadd.f32 %v3080_v46, %v2672_v3  ;;  %v2670_v40 = vadd.f32 %v4197_v20, %v2647_v29 }
 0x337   : > { %2749 = vst.msk [vmem:[%s4209_s19 + $0x60] sm:$0xff] %vm649_vm0, %v2733_v60  ;;  %v2736_v53 = vmax.f32 %v2720_v12, 0.0  ;;  %v2718_v0 = vadd.f32 %v3076_v6, %v2670_v40 }
 0x339   : > { %2752 = vst.msk [vmem:[%s4209_s19 + $0x78] sm:$0xff] %vm649_vm0, %v2736_v53  ;;  %v2734_v35 = vmax.f32 %v2718_v0, 0.0 }
 0x33b   : > { %2750 = vst.msk [vmem:[%s4209_s19 + $0x68] sm:$0xff] %vm649_vm0, %v2734_v35 }
 0x33c PF: > { %s22_s25 = sadd.s32 1, %s3504_s25   ;;  %s4317_s17 = sld [smem:[#allocation3_spill]] }
 0x33d   : > { %p19_p12 = scmp.ge.s32.totalorder %s22_s25, 6   ;;  %s4318_s29 = sld [smem:[#allocation4_spill]] }
 0x33e   : > { %s4319_s21 = smov %s3496_s23  ;;  %s4320_s22 = smov %s3500_s24 }
 0x33f   :  { %21 = sbr.rel (!%p19_p12) target bundleno = 4 (0x4), region = 115 }
 0x342   : > { %s4321_s23 = smov %s4317_s17 }
 0x343   : > { %s4322_s24 = smov %s4318_s29 }

</bundles_post_ra>
